<compile_context>
chip_gen: v7x
topology: tpu7x:2x2x1
jax: 0.10.0
libtpu: 0.0.40
codegen_flags: <defaults>
</compile_context>

<pallas_src>
import functools

import jax
import jax.numpy as jnp
from jax import lax
from jax.experimental import pallas as pl
from jax.experimental.pallas import tpu as pltpu


def _round_up(n, m):
    return ((n + m - 1) // m) * m


def encoder_kernel(xa_ref, w1_ref, w2_ref, out_ref, proj_ref,
                   *, top, h1, h2, gp1, gp2):
    """2-layer LSTM recurrence over a (seq_len, top) augmented input.

    w1_ref: (top + h1, 4*gp1)   rows [0:top)        = [W1_ih ; b1 ; 0-pad]
                                rows [top:top+h1)   = W1_hh
    w2_ref: (>= h1+h2+1, 4*gp2) rows [0:h1)         = W2_ih
                                rows [h1:h1+h2)     = W2_hh
                                row  [h1+h2]        = b2
    Gate column layout (both layers): [i | f | g | o], each gate padded to a
    128-lane multiple (gp1 / gp2) so every gate slice is lane-aligned.
    """
    seq_len = xa_ref.shape[0]

    # Hoisted layer-1 input projection for ALL timesteps (b1 folded in via the
    # ones-column of x_aug matching the bias row of w1_ref's top block).
    proj_ref[...] = jnp.dot(xa_ref[...], w1_ref[0:top, :],
                            preferred_element_type=jnp.float32)

    # b2: one small row, loaded once outside the recurrence.
    b2v = w2_ref[h1 + h2:h1 + h2 + 1, :]

    def gates(g, c_prev, gp):
        # Each slice is a full, lane-aligned vreg: activation per gate only.
        i = jax.nn.sigmoid(g[:, 0 * gp:1 * gp])
        f = jax.nn.sigmoid(g[:, 1 * gp:2 * gp])
        gg = jnp.tanh(g[:, 2 * gp:3 * gp])
        o = jax.nn.sigmoid(g[:, 3 * gp:4 * gp])
        c = f * c_prev + i * gg
        return o * jnp.tanh(c), c

    def step(t, carry):
        h1_s, c1_s, h2_s, c2_s = carry

        # Layer 1: only the recurrent matmul (K = h1, unpadded) is on the
        # serial path; the input half comes from the hoisted projection.
        g1 = proj_ref[pl.ds(t, 1), :] + jnp.dot(
            h1_s[:, :h1], w1_ref[top:top + h1, :],
            preferred_element_type=jnp.float32)
        h1_n, c1_n = gates(g1, c1_s, gp1)

        # Layer 2: the h2-recurrent dot depends only on last step's state, so
        # the unrolled scheduler overlaps it with layer 1 purely from data
        # dependences (no source-order tricks needed).
        g2 = (jnp.dot(h2_s[:, :h2], w2_ref[h1:h1 + h2, :],
                      preferred_element_type=jnp.float32)
              + jnp.dot(h1_n[:, :h1], w2_ref[0:h1, :],
                        preferred_element_type=jnp.float32)
              + b2v)
        h2_n, c2_n = gates(g2, c2_s, gp2)

        return h1_n, c1_n, h2_n, c2_n

    init = (jnp.zeros((1, gp1), jnp.float32),
            jnp.zeros((1, gp1), jnp.float32),
            jnp.zeros((1, gp2), jnp.float32),
            jnp.zeros((1, gp2), jnp.float32))

    # Full unroll for short sequences; cap for long ones to bound live ranges.
    unroll = seq_len if seq_len <= 16 else 8
    _, _, h2_final, _ = lax.fori_loop(0, seq_len, step, init, unroll=unroll)

    # hidden_n of rnn2 reshaped to (1, embedding_dim): first h2 (valid) lanes.
    out_ref[...] = h2_final[:, :h2]


def pack_params(params, n_features):
    """One-time packing of the six LSTM arrays into two kernel buffers.

    * Each gate's columns are zero-padded to a 128-lane multiple so gate
      slices in the kernel are lane-aligned full vregs (no XLU rotates).
    * b1 becomes a row of the layer-1 top block (matched by a ones-column
      appended to x in the wrapper); b2 becomes the last row of the layer-2
      buffer.  Kernel prologue: 3 input DMAs instead of 7.
    * The K dims used by the per-step recurrent matmuls stay unpadded.
    """
    w1i, w1h, b1, w2i, w2h, b2 = params
    hidden = w1h.shape[0]
    emb = w2h.shape[0]
    gp1 = _round_up(hidden, 128)
    gp2 = _round_up(emb, 128)
    top = _round_up(n_features + 1, 8)

    def pad_gate_cols(w, h, gp):
        k = w.shape[0]
        w4 = w.reshape(k, 4, h)
        out = jnp.zeros((k, 4, gp), jnp.float32).at[:, :, :h].set(w4)
        return out.reshape(k, 4 * gp)

    w1i_p = pad_gate_cols(w1i, hidden, gp1)     # (n_features, 4*gp1)
    w1h_p = pad_gate_cols(w1h, hidden, gp1)     # (hidden,     4*gp1)
    b1_p = pad_gate_cols(b1, hidden, gp1)       # (1,          4*gp1)
    w2i_p = pad_gate_cols(w2i, emb, gp2)        # (hidden,     4*gp2)
    w2h_p = pad_gate_cols(w2h, emb, gp2)        # (emb,        4*gp2)
    b2_p = pad_gate_cols(b2, emb, gp2)          # (1,          4*gp2)

    w1_top = jnp.zeros((top, 4 * gp1), jnp.float32)
    w1_top = w1_top.at[:n_features, :].set(w1i_p).at[n_features, :].set(b1_p[0])
    w1_packed = jnp.concatenate([w1_top, w1h_p], axis=0)   # (top+hidden, 4*gp1)

    n2 = hidden + emb + 1
    pad2 = _round_up(n2, 8) - n2
    w2_packed = jnp.concatenate(
        [w2i_p, w2h_p, b2_p, jnp.zeros((pad2, 4 * gp2), jnp.float32)], axis=0)

    meta = dict(top=top, gp1=gp1, gp2=gp2, hidden=hidden, emb=emb)
    return w1_packed, w2_packed, meta


def encoder_forward(x, w1_packed, w2_packed, meta):
    """x: (seq_len, n_features) float32.  Returns (1, embedding_dim)."""
    seq_len, n_features = x.shape
    top, gp1, gp2 = meta["top"], meta["gp1"], meta["gp2"]
    hidden, emb = meta["hidden"], meta["emb"]

    # Augment x with a ones column (folds b1 into the hoisted projection).
    xa = jnp.zeros((seq_len, top), jnp.float32)
    xa = xa.at[:, :n_features].set(x).at[:, n_features].set(1.0)

    kernel = functools.partial(encoder_kernel, top=top, h1=hidden, h2=emb,
                               gp1=gp1, gp2=gp2)
    vmem = pl.BlockSpec(memory_space=pltpu.MemorySpace.VMEM)
    return pl.pallas_call(
        kernel,
        out_shape=jax.ShapeDtypeStruct((1, emb), jnp.float32),
        in_specs=[vmem, vmem, vmem],
        out_specs=vmem,
        scratch_shapes=[pltpu.VMEM((seq_len, 4 * gp1), jnp.float32)],
    )(xa, w1_packed, w2_packed)


def make_params(key, n_features, embedding_dim):
    """Deterministic LSTM params, PyTorch-style uniform(-k, k) init.

    Stored pre-transposed: (input_dim, 4*hidden) / (hidden, 4*hidden), gate
    order [i, f, g, o]; b_ih + b_hh pre-summed as (1, 4*hidden)."""
    hidden_dim = 2 * embedding_dim
    ks = jax.random.split(key, 8)

    def unif(k, shape, bound):
        return jax.random.uniform(k, shape, jnp.float32, -bound, bound)

    k1 = 1.0 / jnp.sqrt(hidden_dim)
    k2 = 1.0 / jnp.sqrt(embedding_dim)
    w1i = unif(ks[0], (n_features, 4 * hidden_dim), k1)
    w1h = unif(ks[1], (hidden_dim, 4 * hidden_dim), k1)
    b1 = (unif(ks[2], (1, 4 * hidden_dim), k1)
          + unif(ks[3], (1, 4 * hidden_dim), k1))
    w2i = unif(ks[4], (hidden_dim, 4 * embedding_dim), k2)
    w2h = unif(ks[5], (embedding_dim, 4 * embedding_dim), k2)
    b2 = (unif(ks[6], (1, 4 * embedding_dim), k2)
          + unif(ks[7], (1, 4 * embedding_dim), k2))
    return w1i, w1h, b1, w2i, w2h, b2


def encoder_reference(x, params):
    """Pure-JAX reference with identical semantics (PyTorch-style cells)."""
    w1i, w1h, b1, w2i, w2h, b2 = params
    h1_dim = w1h.shape[0]
    h2_dim = w2h.shape[0]

    def cell(x_t, h, c, wi, wh, b, hd):
        g = x_t @ wi + h @ wh + b
        i = jax.nn.sigmoid(g[:, 0 * hd:1 * hd])
        f = jax.nn.sigmoid(g[:, 1 * hd:2 * hd])
        gg = jnp.tanh(g[:, 2 * hd:3 * hd])
        o = jax.nn.sigmoid(g[:, 3 * hd:4 * hd])
        c = f * c + i * gg
        return o * jnp.tanh(c), c

    h1 = jnp.zeros((1, h1_dim)); c1 = jnp.zeros((1, h1_dim))
    h2 = jnp.zeros((1, h2_dim)); c2 = jnp.zeros((1, h2_dim))
    for t in range(x.shape[0]):
        x_t = x[t:t + 1, :]
        h1, c1 = cell(x_t, h1, c1, w1i, w1h, b1, h1_dim)
        h2, c2 = cell(h1, h2, c2, w2i, w2h, b2, h2_dim)
    return h2


if __name__ == "__main__":
    seq_len, n_features, embedding_dim = 8, 4, 32

    key = jax.random.PRNGKey(0)
    kx, kp = jax.random.split(key)
    x = jax.random.normal(kx, (seq_len, n_features), jnp.float32)
    params = make_params(kp, n_features, embedding_dim)

    # Packing is one-time (per set of weights), not per forward call.
    w1_packed, w2_packed, meta = pack_params(params, n_features)

    out = encoder_forward(x, w1_packed, w2_packed, meta)
    out = jax.block_until_ready(out)

    ref = encoder_reference(x, params)
    assert out.shape == (1, embedding_dim)
    assert jnp.allclose(out, ref, atol=1e-5, rtol=1e-5)

    print("KERNEL_OK")
</pallas_src>

<mosaic_0001>
module attributes {stable_mosaic.version = 11 : i64} {
  func.func @encoder_kernel(%arg0: memref<8x8xf32, #tpu.memory_space<vmem>>, %arg1: memref<72x512xf32, #tpu.memory_space<vmem>>, %arg2: memref<104x512xf32, #tpu.memory_space<vmem>>, %arg3: memref<1x32xf32, #tpu.memory_space<vmem>>, %arg4: memref<8x512xf32, #tpu.memory_space<vmem>>) attributes {dimension_semantics = [], scalar_prefetch = 0 : i64, scratch_operands = 1 : i64, tpu.core_type = #tpu.core_type<tc>} {
    %c0 = arith.constant 0 : index
    %c0_0 = arith.constant 0 : index
    %0 = vector.load %arg0[%c0, %c0_0] : memref<8x8xf32, #tpu.memory_space<vmem>>, vector<8x8xf32>
    %c0_1 = arith.constant 0 : index
    %c0_2 = arith.constant 0 : index
    %1 = vector.load %arg1[%c0_1, %c0_2] : memref<72x512xf32, #tpu.memory_space<vmem>>, vector<8x512xf32>
    %cst = arith.constant dense<0.000000e+00> : vector<8x512xf32>
    %2 = tpu.matmul %0, %1, %cst {dimension_numbers = #tpu.dot_dimension_numbers<[1], [0], [0], [1], [0, 0, 1, 1], [], []>} : vector<8x8xf32>, vector<8x512xf32>, vector<8x512xf32> -> vector<8x512xf32>
    %c0_3 = arith.constant 0 : index
    %c0_4 = arith.constant 0 : index
    %3 = vector.load %arg4[%c0_3, %c0_4] : memref<8x512xf32, #tpu.memory_space<vmem>>, vector<8x512xf32>
    tpu.vector_store %arg4[%c0_3, %c0_4], %2 {strides = array<i32>} : memref<8x512xf32, #tpu.memory_space<vmem>>, vector<8x512xf32>,
    %c96 = arith.constant 96 : index
    %c0_5 = arith.constant 0 : index
    %4 = vector.load %arg2[%c96, %c0_5] : memref<104x512xf32, #tpu.memory_space<vmem>>, vector<1x512xf32>
    %cst_6 = arith.constant 0.000000e+00 : f32
    %5 = vector.broadcast %cst_6 : f32 to vector<1x128xf32>
    %cst_7 = arith.constant 0.000000e+00 : f32
    %6 = vector.broadcast %cst_7 : f32 to vector<1x128xf32>
    %cst_8 = arith.constant 0.000000e+00 : f32
    %7 = vector.broadcast %cst_8 : f32 to vector<1x128xf32>
    %cst_9 = arith.constant 0.000000e+00 : f32
    %8 = vector.broadcast %cst_9 : f32 to vector<1x128xf32>
    %c0_i32 = arith.constant 0 : i32
    %9 = arith.index_cast %c0_i32 : i32 to index
    %c0_10 = arith.constant 0 : index
    %10 = vector.load %arg4[%9, %c0_10] : memref<8x512xf32, #tpu.memory_space<vmem>>, vector<1x512xf32>
    %11 = vector.extract_strided_slice %5 {offsets = [0, 0], sizes = [1, 64], strides = [1, 1]} : vector<1x128xf32> to vector<1x64xf32>
    %c8 = arith.constant 8 : index
    %c0_11 = arith.constant 0 : index
    %12 = vector.load %arg1[%c8, %c0_11] : memref<72x512xf32, #tpu.memory_space<vmem>>, vector<64x512xf32>
    %cst_12 = arith.constant dense<0.000000e+00> : vector<1x512xf32>
    %13 = tpu.matmul %11, %12, %cst_12 {dimension_numbers = #tpu.dot_dimension_numbers<[1], [0], [0], [1], [0, 0, 1, 1], [], []>} : vector<1x64xf32>, vector<64x512xf32>, vector<1x512xf32> -> vector<1x512xf32>
    %14 = arith.addf %10, %13 : vector<1x512xf32>
    %15 = vector.extract_strided_slice %14 {offsets = [0, 0], sizes = [1, 128], strides = [1, 1]} : vector<1x512xf32> to vector<1x128xf32>
    %16 = arith.negf %15 : vector<1x128xf32>
    %17 = math.exp %16 : vector<1x128xf32>
    %cst_13 = arith.constant 1.000000e+00 : f32
    %18 = vector.broadcast %cst_13 : f32 to vector<1x128xf32>
    %19 = arith.addf %18, %17 : vector<1x128xf32>
    %20 = arith.divf %18, %19 : vector<1x128xf32>
    %21 = vector.extract_strided_slice %14 {offsets = [0, 128], sizes = [1, 128], strides = [1, 1]} : vector<1x512xf32> to vector<1x128xf32>
    %22 = arith.negf %21 : vector<1x128xf32>
    %23 = math.exp %22 : vector<1x128xf32>
    %cst_14 = arith.constant 1.000000e+00 : f32
    %24 = vector.broadcast %cst_14 : f32 to vector<1x128xf32>
    %25 = arith.addf %24, %23 : vector<1x128xf32>
    %26 = arith.divf %24, %25 : vector<1x128xf32>
    %27 = vector.extract_strided_slice %14 {offsets = [0, 256], sizes = [1, 128], strides = [1, 1]} : vector<1x512xf32> to vector<1x128xf32>
    %28 = math.tanh %27 : vector<1x128xf32>
    %29 = vector.extract_strided_slice %14 {offsets = [0, 384], sizes = [1, 128], strides = [1, 1]} : vector<1x512xf32> to vector<1x128xf32>
    %30 = arith.negf %29 : vector<1x128xf32>
    %31 = math.exp %30 : vector<1x128xf32>
    %cst_15 = arith.constant 1.000000e+00 : f32
    %32 = vector.broadcast %cst_15 : f32 to vector<1x128xf32>
    %33 = arith.addf %32, %31 : vector<1x128xf32>
    %34 = arith.divf %32, %33 : vector<1x128xf32>
    %35 = arith.mulf %26, %6 : vector<1x128xf32>
    %36 = arith.mulf %20, %28 : vector<1x128xf32>
    %37 = arith.addf %35, %36 : vector<1x128xf32>
    %38 = math.tanh %37 : vector<1x128xf32>
    %39 = arith.mulf %34, %38 : vector<1x128xf32>
    %40 = vector.extract_strided_slice %7 {offsets = [0, 0], sizes = [1, 32], strides = [1, 1]} : vector<1x128xf32> to vector<1x32xf32>
    %c64 = arith.constant 64 : index
    %c0_16 = arith.constant 0 : index
    %41 = vector.load %arg2[%c64, %c0_16] : memref<104x512xf32, #tpu.memory_space<vmem>>, vector<32x512xf32>
    %cst_17 = arith.constant dense<0.000000e+00> : vector<1x512xf32>
    %42 = tpu.matmul %40, %41, %cst_17 {dimension_numbers = #tpu.dot_dimension_numbers<[1], [0], [0], [1], [0, 0, 1, 1], [], []>} : vector<1x32xf32>, vector<32x512xf32>, vector<1x512xf32> -> vector<1x512xf32>
    %43 = vector.extract_strided_slice %39 {offsets = [0, 0], sizes = [1, 64], strides = [1, 1]} : vector<1x128xf32> to vector<1x64xf32>
    %c0_18 = arith.constant 0 : index
    %c0_19 = arith.constant 0 : index
    %44 = vector.load %arg2[%c0_18, %c0_19] : memref<104x512xf32, #tpu.memory_space<vmem>>, vector<64x512xf32>
    %cst_20 = arith.constant dense<0.000000e+00> : vector<1x512xf32>
    %45 = tpu.matmul %43, %44, %cst_20 {dimension_numbers = #tpu.dot_dimension_numbers<[1], [0], [0], [1], [0, 0, 1, 1], [], []>} : vector<1x64xf32>, vector<64x512xf32>, vector<1x512xf32> -> vector<1x512xf32>
    %46 = arith.addf %42, %45 : vector<1x512xf32>
    %47 = arith.addf %46, %4 : vector<1x512xf32>
    %48 = vector.extract_strided_slice %47 {offsets = [0, 0], sizes = [1, 128], strides = [1, 1]} : vector<1x512xf32> to vector<1x128xf32>
    %49 = arith.negf %48 : vector<1x128xf32>
    %50 = math.exp %49 : vector<1x128xf32>
    %cst_21 = arith.constant 1.000000e+00 : f32
    %51 = vector.broadcast %cst_21 : f32 to vector<1x128xf32>
    %52 = arith.addf %51, %50 : vector<1x128xf32>
    %53 = arith.divf %51, %52 : vector<1x128xf32>
    %54 = vector.extract_strided_slice %47 {offsets = [0, 128], sizes = [1, 128], strides = [1, 1]} : vector<1x512xf32> to vector<1x128xf32>
    %55 = arith.negf %54 : vector<1x128xf32>
    %56 = math.exp %55 : vector<1x128xf32>
    %cst_22 = arith.constant 1.000000e+00 : f32
    %57 = vector.broadcast %cst_22 : f32 to vector<1x128xf32>
    %58 = arith.addf %57, %56 : vector<1x128xf32>
    %59 = arith.divf %57, %58 : vector<1x128xf32>
    %60 = vector.extract_strided_slice %47 {offsets = [0, 256], sizes = [1, 128], strides = [1, 1]} : vector<1x512xf32> to vector<1x128xf32>
    %61 = math.tanh %60 : vector<1x128xf32>
    %62 = vector.extract_strided_slice %47 {offsets = [0, 384], sizes = [1, 128], strides = [1, 1]} : vector<1x512xf32> to vector<1x128xf32>
    %63 = arith.negf %62 : vector<1x128xf32>
    %64 = math.exp %63 : vector<1x128xf32>
    %cst_23 = arith.constant 1.000000e+00 : f32
    %65 = vector.broadcast %cst_23 : f32 to vector<1x128xf32>
    %66 = arith.addf %65, %64 : vector<1x128xf32>
    %67 = arith.divf %65, %66 : vector<1x128xf32>
    %68 = arith.mulf %59, %8 : vector<1x128xf32>
    %69 = arith.mulf %53, %61 : vector<1x128xf32>
    %70 = arith.addf %68, %69 : vector<1x128xf32>
    %71 = math.tanh %70 : vector<1x128xf32>
    %72 = arith.mulf %67, %71 : vector<1x128xf32>
    %c1_i32 = arith.constant 1 : i32
    %73 = arith.index_cast %c1_i32 : i32 to index
    %c0_24 = arith.constant 0 : index
    %74 = vector.load %arg4[%73, %c0_24] : memref<8x512xf32, #tpu.memory_space<vmem>>, vector<1x512xf32>
    %75 = vector.extract_strided_slice %39 {offsets = [0, 0], sizes = [1, 64], strides = [1, 1]} : vector<1x128xf32> to vector<1x64xf32>
    %c8_25 = arith.constant 8 : index
    %c0_26 = arith.constant 0 : index
    %76 = vector.load %arg1[%c8_25, %c0_26] : memref<72x512xf32, #tpu.memory_space<vmem>>, vector<64x512xf32>
    %cst_27 = arith.constant dense<0.000000e+00> : vector<1x512xf32>
    %77 = tpu.matmul %75, %76, %cst_27 {dimension_numbers = #tpu.dot_dimension_numbers<[1], [0], [0], [1], [0, 0, 1, 1], [], []>} : vector<1x64xf32>, vector<64x512xf32>, vector<1x512xf32> -> vector<1x512xf32>
    %78 = arith.addf %74, %77 : vector<1x512xf32>
    %79 = vector.extract_strided_slice %78 {offsets = [0, 0], sizes = [1, 128], strides = [1, 1]} : vector<1x512xf32> to vector<1x128xf32>
    %80 = arith.negf %79 : vector<1x128xf32>
    %81 = math.exp %80 : vector<1x128xf32>
    %cst_28 = arith.constant 1.000000e+00 : f32
    %82 = vector.broadcast %cst_28 : f32 to vector<1x128xf32>
    %83 = arith.addf %82, %81 : vector<1x128xf32>
    %84 = arith.divf %82, %83 : vector<1x128xf32>
    %85 = vector.extract_strided_slice %78 {offsets = [0, 128], sizes = [1, 128], strides = [1, 1]} : vector<1x512xf32> to vector<1x128xf32>
    %86 = arith.negf %85 : vector<1x128xf32>
    %87 = math.exp %86 : vector<1x128xf32>
    %cst_29 = arith.constant 1.000000e+00 : f32
    %88 = vector.broadcast %cst_29 : f32 to vector<1x128xf32>
    %89 = arith.addf %88, %87 : vector<1x128xf32>
    %90 = arith.divf %88, %89 : vector<1x128xf32>
    %91 = vector.extract_strided_slice %78 {offsets = [0, 256], sizes = [1, 128], strides = [1, 1]} : vector<1x512xf32> to vector<1x128xf32>
    %92 = math.tanh %91 : vector<1x128xf32>
    %93 = vector.extract_strided_slice %78 {offsets = [0, 384], sizes = [1, 128], strides = [1, 1]} : vector<1x512xf32> to vector<1x128xf32>
    %94 = arith.negf %93 : vector<1x128xf32>
    %95 = math.exp %94 : vector<1x128xf32>
    %cst_30 = arith.constant 1.000000e+00 : f32
    %96 = vector.broadcast %cst_30 : f32 to vector<1x128xf32>
    %97 = arith.addf %96, %95 : vector<1x128xf32>
    %98 = arith.divf %96, %97 : vector<1x128xf32>
    %99 = arith.mulf %90, %37 : vector<1x128xf32>
    %100 = arith.mulf %84, %92 : vector<1x128xf32>
    %101 = arith.addf %99, %100 : vector<1x128xf32>
    %102 = math.tanh %101 : vector<1x128xf32>
    %103 = arith.mulf %98, %102 : vector<1x128xf32>
    %104 = vector.extract_strided_slice %72 {offsets = [0, 0], sizes = [1, 32], strides = [1, 1]} : vector<1x128xf32> to vector<1x32xf32>
    %c64_31 = arith.constant 64 : index
    %c0_32 = arith.constant 0 : index
    %105 = vector.load %arg2[%c64_31, %c0_32] : memref<104x512xf32, #tpu.memory_space<vmem>>, vector<32x512xf32>
    %cst_33 = arith.constant dense<0.000000e+00> : vector<1x512xf32>
    %106 = tpu.matmul %104, %105, %cst_33 {dimension_numbers = #tpu.dot_dimension_numbers<[1], [0], [0], [1], [0, 0, 1, 1], [], []>} : vector<1x32xf32>, vector<32x512xf32>, vector<1x512xf32> -> vector<1x512xf32>
    %107 = vector.extract_strided_slice %103 {offsets = [0, 0], sizes = [1, 64], strides = [1, 1]} : vector<1x128xf32> to vector<1x64xf32>
    %c0_34 = arith.constant 0 : index
    %c0_35 = arith.constant 0 : index
    %108 = vector.load %arg2[%c0_34, %c0_35] : memref<104x512xf32, #tpu.memory_space<vmem>>, vector<64x512xf32>
    %cst_36 = arith.constant dense<0.000000e+00> : vector<1x512xf32>
    %109 = tpu.matmul %107, %108, %cst_36 {dimension_numbers = #tpu.dot_dimension_numbers<[1], [0], [0], [1], [0, 0, 1, 1], [], []>} : vector<1x64xf32>, vector<64x512xf32>, vector<1x512xf32> -> vector<1x512xf32>
    %110 = arith.addf %106, %109 : vector<1x512xf32>
    %111 = arith.addf %110, %4 : vector<1x512xf32>
    %112 = vector.extract_strided_slice %111 {offsets = [0, 0], sizes = [1, 128], strides = [1, 1]} : vector<1x512xf32> to vector<1x128xf32>
    %113 = arith.negf %112 : vector<1x128xf32>
    %114 = math.exp %113 : vector<1x128xf32>
    %cst_37 = arith.constant 1.000000e+00 : f32
    %115 = vector.broadcast %cst_37 : f32 to vector<1x128xf32>
    %116 = arith.addf %115, %114 : vector<1x128xf32>
    %117 = arith.divf %115, %116 : vector<1x128xf32>
    %118 = vector.extract_strided_slice %111 {offsets = [0, 128], sizes = [1, 128], strides = [1, 1]} : vector<1x512xf32> to vector<1x128xf32>
    %119 = arith.negf %118 : vector<1x128xf32>
    %120 = math.exp %119 : vector<1x128xf32>
    %cst_38 = arith.constant 1.000000e+00 : f32
    %121 = vector.broadcast %cst_38 : f32 to vector<1x128xf32>
    %122 = arith.addf %121, %120 : vector<1x128xf32>
    %123 = arith.divf %121, %122 : vector<1x128xf32>
    %124 = vector.extract_strided_slice %111 {offsets = [0, 256], sizes = [1, 128], strides = [1, 1]} : vector<1x512xf32> to vector<1x128xf32>
    %125 = math.tanh %124 : vector<1x128xf32>
    %126 = vector.extract_strided_slice %111 {offsets = [0, 384], sizes = [1, 128], strides = [1, 1]} : vector<1x512xf32> to vector<1x128xf32>
    %127 = arith.negf %126 : vector<1x128xf32>
    %128 = math.exp %127 : vector<1x128xf32>
    %cst_39 = arith.constant 1.000000e+00 : f32
    %129 = vector.broadcast %cst_39 : f32 to vector<1x128xf32>
    %130 = arith.addf %129, %128 : vector<1x128xf32>
    %131 = arith.divf %129, %130 : vector<1x128xf32>
    %132 = arith.mulf %123, %70 : vector<1x128xf32>
    %133 = arith.mulf %117, %125 : vector<1x128xf32>
    %134 = arith.addf %132, %133 : vector<1x128xf32>
    %135 = math.tanh %134 : vector<1x128xf32>
    %136 = arith.mulf %131, %135 : vector<1x128xf32>
    %c2_i32 = arith.constant 2 : i32
    %137 = arith.index_cast %c2_i32 : i32 to index
    %c0_40 = arith.constant 0 : index
    %138 = vector.load %arg4[%137, %c0_40] : memref<8x512xf32, #tpu.memory_space<vmem>>, vector<1x512xf32>
    %139 = vector.extract_strided_slice %103 {offsets = [0, 0], sizes = [1, 64], strides = [1, 1]} : vector<1x128xf32> to vector<1x64xf32>
    %c8_41 = arith.constant 8 : index
    %c0_42 = arith.constant 0 : index
    %140 = vector.load %arg1[%c8_41, %c0_42] : memref<72x512xf32, #tpu.memory_space<vmem>>, vector<64x512xf32>
    %cst_43 = arith.constant dense<0.000000e+00> : vector<1x512xf32>
    %141 = tpu.matmul %139, %140, %cst_43 {dimension_numbers = #tpu.dot_dimension_numbers<[1], [0], [0], [1], [0, 0, 1, 1], [], []>} : vector<1x64xf32>, vector<64x512xf32>, vector<1x512xf32> -> vector<1x512xf32>
    %142 = arith.addf %138, %141 : vector<1x512xf32>
    %143 = vector.extract_strided_slice %142 {offsets = [0, 0], sizes = [1, 128], strides = [1, 1]} : vector<1x512xf32> to vector<1x128xf32>
    %144 = arith.negf %143 : vector<1x128xf32>
    %145 = math.exp %144 : vector<1x128xf32>
    %cst_44 = arith.constant 1.000000e+00 : f32
    %146 = vector.broadcast %cst_44 : f32 to vector<1x128xf32>
    %147 = arith.addf %146, %145 : vector<1x128xf32>
    %148 = arith.divf %146, %147 : vector<1x128xf32>
    %149 = vector.extract_strided_slice %142 {offsets = [0, 128], sizes = [1, 128], strides = [1, 1]} : vector<1x512xf32> to vector<1x128xf32>
    %150 = arith.negf %149 : vector<1x128xf32>
    %151 = math.exp %150 : vector<1x128xf32>
    %cst_45 = arith.constant 1.000000e+00 : f32
    %152 = vector.broadcast %cst_45 : f32 to vector<1x128xf32>
    %153 = arith.addf %152, %151 : vector<1x128xf32>
    %154 = arith.divf %152, %153 : vector<1x128xf32>
    %155 = vector.extract_strided_slice %142 {offsets = [0, 256], sizes = [1, 128], strides = [1, 1]} : vector<1x512xf32> to vector<1x128xf32>
    %156 = math.tanh %155 : vector<1x128xf32>
    %157 = vector.extract_strided_slice %142 {offsets = [0, 384], sizes = [1, 128], strides = [1, 1]} : vector<1x512xf32> to vector<1x128xf32>
    %158 = arith.negf %157 : vector<1x128xf32>
    %159 = math.exp %158 : vector<1x128xf32>
    %cst_46 = arith.constant 1.000000e+00 : f32
    %160 = vector.broadcast %cst_46 : f32 to vector<1x128xf32>
    %161 = arith.addf %160, %159 : vector<1x128xf32>
    %162 = arith.divf %160, %161 : vector<1x128xf32>
    %163 = arith.mulf %154, %101 : vector<1x128xf32>
    %164 = arith.mulf %148, %156 : vector<1x128xf32>
    %165 = arith.addf %163, %164 : vector<1x128xf32>
    %166 = math.tanh %165 : vector<1x128xf32>
    %167 = arith.mulf %162, %166 : vector<1x128xf32>
    %168 = vector.extract_strided_slice %136 {offsets = [0, 0], sizes = [1, 32], strides = [1, 1]} : vector<1x128xf32> to vector<1x32xf32>
    %c64_47 = arith.constant 64 : index
    %c0_48 = arith.constant 0 : index
    %169 = vector.load %arg2[%c64_47, %c0_48] : memref<104x512xf32, #tpu.memory_space<vmem>>, vector<32x512xf32>
    %cst_49 = arith.constant dense<0.000000e+00> : vector<1x512xf32>
    %170 = tpu.matmul %168, %169, %cst_49 {dimension_numbers = #tpu.dot_dimension_numbers<[1], [0], [0], [1], [0, 0, 1, 1], [], []>} : vector<1x32xf32>, vector<32x512xf32>, vector<1x512xf32> -> vector<1x512xf32>
    %171 = vector.extract_strided_slice %167 {offsets = [0, 0], sizes = [1, 64], strides = [1, 1]} : vector<1x128xf32> to vector<1x64xf32>
    %c0_50 = arith.constant 0 : index
    %c0_51 = arith.constant 0 : index
    %172 = vector.load %arg2[%c0_50, %c0_51] : memref<104x512xf32, #tpu.memory_space<vmem>>, vector<64x512xf32>
    %cst_52 = arith.constant dense<0.000000e+00> : vector<1x512xf32>
    %173 = tpu.matmul %171, %172, %cst_52 {dimension_numbers = #tpu.dot_dimension_numbers<[1], [0], [0], [1], [0, 0, 1, 1], [], []>} : vector<1x64xf32>, vector<64x512xf32>, vector<1x512xf32> -> vector<1x512xf32>
    %174 = arith.addf %170, %173 : vector<1x512xf32>
    %175 = arith.addf %174, %4 : vector<1x512xf32>
    %176 = vector.extract_strided_slice %175 {offsets = [0, 0], sizes = [1, 128], strides = [1, 1]} : vector<1x512xf32> to vector<1x128xf32>
    %177 = arith.negf %176 : vector<1x128xf32>
    %178 = math.exp %177 : vector<1x128xf32>
    %cst_53 = arith.constant 1.000000e+00 : f32
    %179 = vector.broadcast %cst_53 : f32 to vector<1x128xf32>
    %180 = arith.addf %179, %178 : vector<1x128xf32>
    %181 = arith.divf %179, %180 : vector<1x128xf32>
    %182 = vector.extract_strided_slice %175 {offsets = [0, 128], sizes = [1, 128], strides = [1, 1]} : vector<1x512xf32> to vector<1x128xf32>
    %183 = arith.negf %182 : vector<1x128xf32>
    %184 = math.exp %183 : vector<1x128xf32>
    %cst_54 = arith.constant 1.000000e+00 : f32
    %185 = vector.broadcast %cst_54 : f32 to vector<1x128xf32>
    %186 = arith.addf %185, %184 : vector<1x128xf32>
    %187 = arith.divf %185, %186 : vector<1x128xf32>
    %188 = vector.extract_strided_slice %175 {offsets = [0, 256], sizes = [1, 128], strides = [1, 1]} : vector<1x512xf32> to vector<1x128xf32>
    %189 = math.tanh %188 : vector<1x128xf32>
    %190 = vector.extract_strided_slice %175 {offsets = [0, 384], sizes = [1, 128], strides = [1, 1]} : vector<1x512xf32> to vector<1x128xf32>
    %191 = arith.negf %190 : vector<1x128xf32>
    %192 = math.exp %191 : vector<1x128xf32>
    %cst_55 = arith.constant 1.000000e+00 : f32
    %193 = vector.broadcast %cst_55 : f32 to vector<1x128xf32>
    %194 = arith.addf %193, %192 : vector<1x128xf32>
    %195 = arith.divf %193, %194 : vector<1x128xf32>
    %196 = arith.mulf %187, %134 : vector<1x128xf32>
    %197 = arith.mulf %181, %189 : vector<1x128xf32>
    %198 = arith.addf %196, %197 : vector<1x128xf32>
    %199 = math.tanh %198 : vector<1x128xf32>
    %200 = arith.mulf %195, %199 : vector<1x128xf32>
    %c3_i32 = arith.constant 3 : i32
    %201 = arith.index_cast %c3_i32 : i32 to index
    %c0_56 = arith.constant 0 : index
    %202 = vector.load %arg4[%201, %c0_56] : memref<8x512xf32, #tpu.memory_space<vmem>>, vector<1x512xf32>
    %203 = vector.extract_strided_slice %167 {offsets = [0, 0], sizes = [1, 64], strides = [1, 1]} : vector<1x128xf32> to vector<1x64xf32>
    %c8_57 = arith.constant 8 : index
    %c0_58 = arith.constant 0 : index
    %204 = vector.load %arg1[%c8_57, %c0_58] : memref<72x512xf32, #tpu.memory_space<vmem>>, vector<64x512xf32>
    %cst_59 = arith.constant dense<0.000000e+00> : vector<1x512xf32>
    %205 = tpu.matmul %203, %204, %cst_59 {dimension_numbers = #tpu.dot_dimension_numbers<[1], [0], [0], [1], [0, 0, 1, 1], [], []>} : vector<1x64xf32>, vector<64x512xf32>, vector<1x512xf32> -> vector<1x512xf32>
    %206 = arith.addf %202, %205 : vector<1x512xf32>
    %207 = vector.extract_strided_slice %206 {offsets = [0, 0], sizes = [1, 128], strides = [1, 1]} : vector<1x512xf32> to vector<1x128xf32>
    %208 = arith.negf %207 : vector<1x128xf32>
    %209 = math.exp %208 : vector<1x128xf32>
    %cst_60 = arith.constant 1.000000e+00 : f32
    %210 = vector.broadcast %cst_60 : f32 to vector<1x128xf32>
    %211 = arith.addf %210, %209 : vector<1x128xf32>
    %212 = arith.divf %210, %211 : vector<1x128xf32>
    %213 = vector.extract_strided_slice %206 {offsets = [0, 128], sizes = [1, 128], strides = [1, 1]} : vector<1x512xf32> to vector<1x128xf32>
    %214 = arith.negf %213 : vector<1x128xf32>
    %215 = math.exp %214 : vector<1x128xf32>
    %cst_61 = arith.constant 1.000000e+00 : f32
    %216 = vector.broadcast %cst_61 : f32 to vector<1x128xf32>
    %217 = arith.addf %216, %215 : vector<1x128xf32>
    %218 = arith.divf %216, %217 : vector<1x128xf32>
    %219 = vector.extract_strided_slice %206 {offsets = [0, 256], sizes = [1, 128], strides = [1, 1]} : vector<1x512xf32> to vector<1x128xf32>
    %220 = math.tanh %219 : vector<1x128xf32>
    %221 = vector.extract_strided_slice %206 {offsets = [0, 384], sizes = [1, 128], strides = [1, 1]} : vector<1x512xf32> to vector<1x128xf32>
    %222 = arith.negf %221 : vector<1x128xf32>
    %223 = math.exp %222 : vector<1x128xf32>
    %cst_62 = arith.constant 1.000000e+00 : f32
    %224 = vector.broadcast %cst_62 : f32 to vector<1x128xf32>
    %225 = arith.addf %224, %223 : vector<1x128xf32>
    %226 = arith.divf %224, %225 : vector<1x128xf32>
    %227 = arith.mulf %218, %165 : vector<1x128xf32>
    %228 = arith.mulf %212, %220 : vector<1x128xf32>
    %229 = arith.addf %227, %228 : vector<1x128xf32>
    %230 = math.tanh %229 : vector<1x128xf32>
    %231 = arith.mulf %226, %230 : vector<1x128xf32>
    %232 = vector.extract_strided_slice %200 {offsets = [0, 0], sizes = [1, 32], strides = [1, 1]} : vector<1x128xf32> to vector<1x32xf32>
    %c64_63 = arith.constant 64 : index
    %c0_64 = arith.constant 0 : index
    %233 = vector.load %arg2[%c64_63, %c0_64] : memref<104x512xf32, #tpu.memory_space<vmem>>, vector<32x512xf32>
    %cst_65 = arith.constant dense<0.000000e+00> : vector<1x512xf32>
    %234 = tpu.matmul %232, %233, %cst_65 {dimension_numbers = #tpu.dot_dimension_numbers<[1], [0], [0], [1], [0, 0, 1, 1], [], []>} : vector<1x32xf32>, vector<32x512xf32>, vector<1x512xf32> -> vector<1x512xf32>
    %235 = vector.extract_strided_slice %231 {offsets = [0, 0], sizes = [1, 64], strides = [1, 1]} : vector<1x128xf32> to vector<1x64xf32>
    %c0_66 = arith.constant 0 : index
    %c0_67 = arith.constant 0 : index
    %236 = vector.load %arg2[%c0_66, %c0_67] : memref<104x512xf32, #tpu.memory_space<vmem>>, vector<64x512xf32>
    %cst_68 = arith.constant dense<0.000000e+00> : vector<1x512xf32>
    %237 = tpu.matmul %235, %236, %cst_68 {dimension_numbers = #tpu.dot_dimension_numbers<[1], [0], [0], [1], [0, 0, 1, 1], [], []>} : vector<1x64xf32>, vector<64x512xf32>, vector<1x512xf32> -> vector<1x512xf32>
    %238 = arith.addf %234, %237 : vector<1x512xf32>
    %239 = arith.addf %238, %4 : vector<1x512xf32>
    %240 = vector.extract_strided_slice %239 {offsets = [0, 0], sizes = [1, 128], strides = [1, 1]} : vector<1x512xf32> to vector<1x128xf32>
    %241 = arith.negf %240 : vector<1x128xf32>
    %242 = math.exp %241 : vector<1x128xf32>
    %cst_69 = arith.constant 1.000000e+00 : f32
    %243 = vector.broadcast %cst_69 : f32 to vector<1x128xf32>
    %244 = arith.addf %243, %242 : vector<1x128xf32>
    %245 = arith.divf %243, %244 : vector<1x128xf32>
    %246 = vector.extract_strided_slice %239 {offsets = [0, 128], sizes = [1, 128], strides = [1, 1]} : vector<1x512xf32> to vector<1x128xf32>
    %247 = arith.negf %246 : vector<1x128xf32>
    %248 = math.exp %247 : vector<1x128xf32>
    %cst_70 = arith.constant 1.000000e+00 : f32
    %249 = vector.broadcast %cst_70 : f32 to vector<1x128xf32>
    %250 = arith.addf %249, %248 : vector<1x128xf32>
    %251 = arith.divf %249, %250 : vector<1x128xf32>
    %252 = vector.extract_strided_slice %239 {offsets = [0, 256], sizes = [1, 128], strides = [1, 1]} : vector<1x512xf32> to vector<1x128xf32>
    %253 = math.tanh %252 : vector<1x128xf32>
    %254 = vector.extract_strided_slice %239 {offsets = [0, 384], sizes = [1, 128], strides = [1, 1]} : vector<1x512xf32> to vector<1x128xf32>
    %255 = arith.negf %254 : vector<1x128xf32>
    %256 = math.exp %255 : vector<1x128xf32>
    %cst_71 = arith.constant 1.000000e+00 : f32
    %257 = vector.broadcast %cst_71 : f32 to vector<1x128xf32>
    %258 = arith.addf %257, %256 : vector<1x128xf32>
    %259 = arith.divf %257, %258 : vector<1x128xf32>
    %260 = arith.mulf %251, %198 : vector<1x128xf32>
    %261 = arith.mulf %245, %253 : vector<1x128xf32>
    %262 = arith.addf %260, %261 : vector<1x128xf32>
    %263 = math.tanh %262 : vector<1x128xf32>
    %264 = arith.mulf %259, %263 : vector<1x128xf32>
    %c4_i32 = arith.constant 4 : i32
    %265 = arith.index_cast %c4_i32 : i32 to index
    %c0_72 = arith.constant 0 : index
    %266 = vector.load %arg4[%265, %c0_72] : memref<8x512xf32, #tpu.memory_space<vmem>>, vector<1x512xf32>
    %267 = vector.extract_strided_slice %231 {offsets = [0, 0], sizes = [1, 64], strides = [1, 1]} : vector<1x128xf32> to vector<1x64xf32>
    %c8_73 = arith.constant 8 : index
    %c0_74 = arith.constant 0 : index
    %268 = vector.load %arg1[%c8_73, %c0_74] : memref<72x512xf32, #tpu.memory_space<vmem>>, vector<64x512xf32>
    %cst_75 = arith.constant dense<0.000000e+00> : vector<1x512xf32>
    %269 = tpu.matmul %267, %268, %cst_75 {dimension_numbers = #tpu.dot_dimension_numbers<[1], [0], [0], [1], [0, 0, 1, 1], [], []>} : vector<1x64xf32>, vector<64x512xf32>, vector<1x512xf32> -> vector<1x512xf32>
    %270 = arith.addf %266, %269 : vector<1x512xf32>
    %271 = vector.extract_strided_slice %270 {offsets = [0, 0], sizes = [1, 128], strides = [1, 1]} : vector<1x512xf32> to vector<1x128xf32>
    %272 = arith.negf %271 : vector<1x128xf32>
    %273 = math.exp %272 : vector<1x128xf32>
    %cst_76 = arith.constant 1.000000e+00 : f32
    %274 = vector.broadcast %cst_76 : f32 to vector<1x128xf32>
    %275 = arith.addf %274, %273 : vector<1x128xf32>
    %276 = arith.divf %274, %275 : vector<1x128xf32>
    %277 = vector.extract_strided_slice %270 {offsets = [0, 128], sizes = [1, 128], strides = [1, 1]} : vector<1x512xf32> to vector<1x128xf32>
    %278 = arith.negf %277 : vector<1x128xf32>
    %279 = math.exp %278 : vector<1x128xf32>
    %cst_77 = arith.constant 1.000000e+00 : f32
    %280 = vector.broadcast %cst_77 : f32 to vector<1x128xf32>
    %281 = arith.addf %280, %279 : vector<1x128xf32>
    %282 = arith.divf %280, %281 : vector<1x128xf32>
    %283 = vector.extract_strided_slice %270 {offsets = [0, 256], sizes = [1, 128], strides = [1, 1]} : vector<1x512xf32> to vector<1x128xf32>
    %284 = math.tanh %283 : vector<1x128xf32>
    %285 = vector.extract_strided_slice %270 {offsets = [0, 384], sizes = [1, 128], strides = [1, 1]} : vector<1x512xf32> to vector<1x128xf32>
    %286 = arith.negf %285 : vector<1x128xf32>
    %287 = math.exp %286 : vector<1x128xf32>
    %cst_78 = arith.constant 1.000000e+00 : f32
    %288 = vector.broadcast %cst_78 : f32 to vector<1x128xf32>
    %289 = arith.addf %288, %287 : vector<1x128xf32>
    %290 = arith.divf %288, %289 : vector<1x128xf32>
    %291 = arith.mulf %282, %229 : vector<1x128xf32>
    %292 = arith.mulf %276, %284 : vector<1x128xf32>
    %293 = arith.addf %291, %292 : vector<1x128xf32>
    %294 = math.tanh %293 : vector<1x128xf32>
    %295 = arith.mulf %290, %294 : vector<1x128xf32>
    %296 = vector.extract_strided_slice %264 {offsets = [0, 0], sizes = [1, 32], strides = [1, 1]} : vector<1x128xf32> to vector<1x32xf32>
    %c64_79 = arith.constant 64 : index
    %c0_80 = arith.constant 0 : index
    %297 = vector.load %arg2[%c64_79, %c0_80] : memref<104x512xf32, #tpu.memory_space<vmem>>, vector<32x512xf32>
    %cst_81 = arith.constant dense<0.000000e+00> : vector<1x512xf32>
    %298 = tpu.matmul %296, %297, %cst_81 {dimension_numbers = #tpu.dot_dimension_numbers<[1], [0], [0], [1], [0, 0, 1, 1], [], []>} : vector<1x32xf32>, vector<32x512xf32>, vector<1x512xf32> -> vector<1x512xf32>
    %299 = vector.extract_strided_slice %295 {offsets = [0, 0], sizes = [1, 64], strides = [1, 1]} : vector<1x128xf32> to vector<1x64xf32>
    %c0_82 = arith.constant 0 : index
    %c0_83 = arith.constant 0 : index
    %300 = vector.load %arg2[%c0_82, %c0_83] : memref<104x512xf32, #tpu.memory_space<vmem>>, vector<64x512xf32>
    %cst_84 = arith.constant dense<0.000000e+00> : vector<1x512xf32>
    %301 = tpu.matmul %299, %300, %cst_84 {dimension_numbers = #tpu.dot_dimension_numbers<[1], [0], [0], [1], [0, 0, 1, 1], [], []>} : vector<1x64xf32>, vector<64x512xf32>, vector<1x512xf32> -> vector<1x512xf32>
    %302 = arith.addf %298, %301 : vector<1x512xf32>
    %303 = arith.addf %302, %4 : vector<1x512xf32>
    %304 = vector.extract_strided_slice %303 {offsets = [0, 0], sizes = [1, 128], strides = [1, 1]} : vector<1x512xf32> to vector<1x128xf32>
    %305 = arith.negf %304 : vector<1x128xf32>
    %306 = math.exp %305 : vector<1x128xf32>
    %cst_85 = arith.constant 1.000000e+00 : f32
    %307 = vector.broadcast %cst_85 : f32 to vector<1x128xf32>
    %308 = arith.addf %307, %306 : vector<1x128xf32>
    %309 = arith.divf %307, %308 : vector<1x128xf32>
    %310 = vector.extract_strided_slice %303 {offsets = [0, 128], sizes = [1, 128], strides = [1, 1]} : vector<1x512xf32> to vector<1x128xf32>
    %311 = arith.negf %310 : vector<1x128xf32>
    %312 = math.exp %311 : vector<1x128xf32>
    %cst_86 = arith.constant 1.000000e+00 : f32
    %313 = vector.broadcast %cst_86 : f32 to vector<1x128xf32>
    %314 = arith.addf %313, %312 : vector<1x128xf32>
    %315 = arith.divf %313, %314 : vector<1x128xf32>
    %316 = vector.extract_strided_slice %303 {offsets = [0, 256], sizes = [1, 128], strides = [1, 1]} : vector<1x512xf32> to vector<1x128xf32>
    %317 = math.tanh %316 : vector<1x128xf32>
    %318 = vector.extract_strided_slice %303 {offsets = [0, 384], sizes = [1, 128], strides = [1, 1]} : vector<1x512xf32> to vector<1x128xf32>
    %319 = arith.negf %318 : vector<1x128xf32>
    %320 = math.exp %319 : vector<1x128xf32>
    %cst_87 = arith.constant 1.000000e+00 : f32
    %321 = vector.broadcast %cst_87 : f32 to vector<1x128xf32>
    %322 = arith.addf %321, %320 : vector<1x128xf32>
    %323 = arith.divf %321, %322 : vector<1x128xf32>
    %324 = arith.mulf %315, %262 : vector<1x128xf32>
    %325 = arith.mulf %309, %317 : vector<1x128xf32>
    %326 = arith.addf %324, %325 : vector<1x128xf32>
    %327 = math.tanh %326 : vector<1x128xf32>
    %328 = arith.mulf %323, %327 : vector<1x128xf32>
    %c5_i32 = arith.constant 5 : i32
    %329 = arith.index_cast %c5_i32 : i32 to index
    %c0_88 = arith.constant 0 : index
    %330 = vector.load %arg4[%329, %c0_88] : memref<8x512xf32, #tpu.memory_space<vmem>>, vector<1x512xf32>
    %331 = vector.extract_strided_slice %295 {offsets = [0, 0], sizes = [1, 64], strides = [1, 1]} : vector<1x128xf32> to vector<1x64xf32>
    %c8_89 = arith.constant 8 : index
    %c0_90 = arith.constant 0 : index
    %332 = vector.load %arg1[%c8_89, %c0_90] : memref<72x512xf32, #tpu.memory_space<vmem>>, vector<64x512xf32>
    %cst_91 = arith.constant dense<0.000000e+00> : vector<1x512xf32>
    %333 = tpu.matmul %331, %332, %cst_91 {dimension_numbers = #tpu.dot_dimension_numbers<[1], [0], [0], [1], [0, 0, 1, 1], [], []>} : vector<1x64xf32>, vector<64x512xf32>, vector<1x512xf32> -> vector<1x512xf32>
    %334 = arith.addf %330, %333 : vector<1x512xf32>
    %335 = vector.extract_strided_slice %334 {offsets = [0, 0], sizes = [1, 128], strides = [1, 1]} : vector<1x512xf32> to vector<1x128xf32>
    %336 = arith.negf %335 : vector<1x128xf32>
    %337 = math.exp %336 : vector<1x128xf32>
    %cst_92 = arith.constant 1.000000e+00 : f32
    %338 = vector.broadcast %cst_92 : f32 to vector<1x128xf32>
    %339 = arith.addf %338, %337 : vector<1x128xf32>
    %340 = arith.divf %338, %339 : vector<1x128xf32>
    %341 = vector.extract_strided_slice %334 {offsets = [0, 128], sizes = [1, 128], strides = [1, 1]} : vector<1x512xf32> to vector<1x128xf32>
    %342 = arith.negf %341 : vector<1x128xf32>
    %343 = math.exp %342 : vector<1x128xf32>
    %cst_93 = arith.constant 1.000000e+00 : f32
    %344 = vector.broadcast %cst_93 : f32 to vector<1x128xf32>
    %345 = arith.addf %344, %343 : vector<1x128xf32>
    %346 = arith.divf %344, %345 : vector<1x128xf32>
    %347 = vector.extract_strided_slice %334 {offsets = [0, 256], sizes = [1, 128], strides = [1, 1]} : vector<1x512xf32> to vector<1x128xf32>
    %348 = math.tanh %347 : vector<1x128xf32>
    %349 = vector.extract_strided_slice %334 {offsets = [0, 384], sizes = [1, 128], strides = [1, 1]} : vector<1x512xf32> to vector<1x128xf32>
    %350 = arith.negf %349 : vector<1x128xf32>
    %351 = math.exp %350 : vector<1x128xf32>
    %cst_94 = arith.constant 1.000000e+00 : f32
    %352 = vector.broadcast %cst_94 : f32 to vector<1x128xf32>
    %353 = arith.addf %352, %351 : vector<1x128xf32>
    %354 = arith.divf %352, %353 : vector<1x128xf32>
    %355 = arith.mulf %346, %293 : vector<1x128xf32>
    %356 = arith.mulf %340, %348 : vector<1x128xf32>
    %357 = arith.addf %355, %356 : vector<1x128xf32>
    %358 = math.tanh %357 : vector<1x128xf32>
    %359 = arith.mulf %354, %358 : vector<1x128xf32>
    %360 = vector.extract_strided_slice %328 {offsets = [0, 0], sizes = [1, 32], strides = [1, 1]} : vector<1x128xf32> to vector<1x32xf32>
    %c64_95 = arith.constant 64 : index
    %c0_96 = arith.constant 0 : index
    %361 = vector.load %arg2[%c64_95, %c0_96] : memref<104x512xf32, #tpu.memory_space<vmem>>, vector<32x512xf32>
    %cst_97 = arith.constant dense<0.000000e+00> : vector<1x512xf32>
    %362 = tpu.matmul %360, %361, %cst_97 {dimension_numbers = #tpu.dot_dimension_numbers<[1], [0], [0], [1], [0, 0, 1, 1], [], []>} : vector<1x32xf32>, vector<32x512xf32>, vector<1x512xf32> -> vector<1x512xf32>
    %363 = vector.extract_strided_slice %359 {offsets = [0, 0], sizes = [1, 64], strides = [1, 1]} : vector<1x128xf32> to vector<1x64xf32>
    %c0_98 = arith.constant 0 : index
    %c0_99 = arith.constant 0 : index
    %364 = vector.load %arg2[%c0_98, %c0_99] : memref<104x512xf32, #tpu.memory_space<vmem>>, vector<64x512xf32>
    %cst_100 = arith.constant dense<0.000000e+00> : vector<1x512xf32>
    %365 = tpu.matmul %363, %364, %cst_100 {dimension_numbers = #tpu.dot_dimension_numbers<[1], [0], [0], [1], [0, 0, 1, 1], [], []>} : vector<1x64xf32>, vector<64x512xf32>, vector<1x512xf32> -> vector<1x512xf32>
    %366 = arith.addf %362, %365 : vector<1x512xf32>
    %367 = arith.addf %366, %4 : vector<1x512xf32>
    %368 = vector.extract_strided_slice %367 {offsets = [0, 0], sizes = [1, 128], strides = [1, 1]} : vector<1x512xf32> to vector<1x128xf32>
    %369 = arith.negf %368 : vector<1x128xf32>
    %370 = math.exp %369 : vector<1x128xf32>
    %cst_101 = arith.constant 1.000000e+00 : f32
    %371 = vector.broadcast %cst_101 : f32 to vector<1x128xf32>
    %372 = arith.addf %371, %370 : vector<1x128xf32>
    %373 = arith.divf %371, %372 : vector<1x128xf32>
    %374 = vector.extract_strided_slice %367 {offsets = [0, 128], sizes = [1, 128], strides = [1, 1]} : vector<1x512xf32> to vector<1x128xf32>
    %375 = arith.negf %374 : vector<1x128xf32>
    %376 = math.exp %375 : vector<1x128xf32>
    %cst_102 = arith.constant 1.000000e+00 : f32
    %377 = vector.broadcast %cst_102 : f32 to vector<1x128xf32>
    %378 = arith.addf %377, %376 : vector<1x128xf32>
    %379 = arith.divf %377, %378 : vector<1x128xf32>
    %380 = vector.extract_strided_slice %367 {offsets = [0, 256], sizes = [1, 128], strides = [1, 1]} : vector<1x512xf32> to vector<1x128xf32>
    %381 = math.tanh %380 : vector<1x128xf32>
    %382 = vector.extract_strided_slice %367 {offsets = [0, 384], sizes = [1, 128], strides = [1, 1]} : vector<1x512xf32> to vector<1x128xf32>
    %383 = arith.negf %382 : vector<1x128xf32>
    %384 = math.exp %383 : vector<1x128xf32>
    %cst_103 = arith.constant 1.000000e+00 : f32
    %385 = vector.broadcast %cst_103 : f32 to vector<1x128xf32>
    %386 = arith.addf %385, %384 : vector<1x128xf32>
    %387 = arith.divf %385, %386 : vector<1x128xf32>
    %388 = arith.mulf %379, %326 : vector<1x128xf32>
    %389 = arith.mulf %373, %381 : vector<1x128xf32>
    %390 = arith.addf %388, %389 : vector<1x128xf32>
    %391 = math.tanh %390 : vector<1x128xf32>
    %392 = arith.mulf %387, %391 : vector<1x128xf32>
    %c6_i32 = arith.constant 6 : i32
    %393 = arith.index_cast %c6_i32 : i32 to index
    %c0_104 = arith.constant 0 : index
    %394 = vector.load %arg4[%393, %c0_104] : memref<8x512xf32, #tpu.memory_space<vmem>>, vector<1x512xf32>
    %395 = vector.extract_strided_slice %359 {offsets = [0, 0], sizes = [1, 64], strides = [1, 1]} : vector<1x128xf32> to vector<1x64xf32>
    %c8_105 = arith.constant 8 : index
    %c0_106 = arith.constant 0 : index
    %396 = vector.load %arg1[%c8_105, %c0_106] : memref<72x512xf32, #tpu.memory_space<vmem>>, vector<64x512xf32>
    %cst_107 = arith.constant dense<0.000000e+00> : vector<1x512xf32>
    %397 = tpu.matmul %395, %396, %cst_107 {dimension_numbers = #tpu.dot_dimension_numbers<[1], [0], [0], [1], [0, 0, 1, 1], [], []>} : vector<1x64xf32>, vector<64x512xf32>, vector<1x512xf32> -> vector<1x512xf32>
    %398 = arith.addf %394, %397 : vector<1x512xf32>
    %399 = vector.extract_strided_slice %398 {offsets = [0, 0], sizes = [1, 128], strides = [1, 1]} : vector<1x512xf32> to vector<1x128xf32>
    %400 = arith.negf %399 : vector<1x128xf32>
    %401 = math.exp %400 : vector<1x128xf32>
    %cst_108 = arith.constant 1.000000e+00 : f32
    %402 = vector.broadcast %cst_108 : f32 to vector<1x128xf32>
    %403 = arith.addf %402, %401 : vector<1x128xf32>
    %404 = arith.divf %402, %403 : vector<1x128xf32>
    %405 = vector.extract_strided_slice %398 {offsets = [0, 128], sizes = [1, 128], strides = [1, 1]} : vector<1x512xf32> to vector<1x128xf32>
    %406 = arith.negf %405 : vector<1x128xf32>
    %407 = math.exp %406 : vector<1x128xf32>
    %cst_109 = arith.constant 1.000000e+00 : f32
    %408 = vector.broadcast %cst_109 : f32 to vector<1x128xf32>
    %409 = arith.addf %408, %407 : vector<1x128xf32>
    %410 = arith.divf %408, %409 : vector<1x128xf32>
    %411 = vector.extract_strided_slice %398 {offsets = [0, 256], sizes = [1, 128], strides = [1, 1]} : vector<1x512xf32> to vector<1x128xf32>
    %412 = math.tanh %411 : vector<1x128xf32>
    %413 = vector.extract_strided_slice %398 {offsets = [0, 384], sizes = [1, 128], strides = [1, 1]} : vector<1x512xf32> to vector<1x128xf32>
    %414 = arith.negf %413 : vector<1x128xf32>
    %415 = math.exp %414 : vector<1x128xf32>
    %cst_110 = arith.constant 1.000000e+00 : f32
    %416 = vector.broadcast %cst_110 : f32 to vector<1x128xf32>
    %417 = arith.addf %416, %415 : vector<1x128xf32>
    %418 = arith.divf %416, %417 : vector<1x128xf32>
    %419 = arith.mulf %410, %357 : vector<1x128xf32>
    %420 = arith.mulf %404, %412 : vector<1x128xf32>
    %421 = arith.addf %419, %420 : vector<1x128xf32>
    %422 = math.tanh %421 : vector<1x128xf32>
    %423 = arith.mulf %418, %422 : vector<1x128xf32>
    %424 = vector.extract_strided_slice %392 {offsets = [0, 0], sizes = [1, 32], strides = [1, 1]} : vector<1x128xf32> to vector<1x32xf32>
    %c64_111 = arith.constant 64 : index
    %c0_112 = arith.constant 0 : index
    %425 = vector.load %arg2[%c64_111, %c0_112] : memref<104x512xf32, #tpu.memory_space<vmem>>, vector<32x512xf32>
    %cst_113 = arith.constant dense<0.000000e+00> : vector<1x512xf32>
    %426 = tpu.matmul %424, %425, %cst_113 {dimension_numbers = #tpu.dot_dimension_numbers<[1], [0], [0], [1], [0, 0, 1, 1], [], []>} : vector<1x32xf32>, vector<32x512xf32>, vector<1x512xf32> -> vector<1x512xf32>
    %427 = vector.extract_strided_slice %423 {offsets = [0, 0], sizes = [1, 64], strides = [1, 1]} : vector<1x128xf32> to vector<1x64xf32>
    %c0_114 = arith.constant 0 : index
    %c0_115 = arith.constant 0 : index
    %428 = vector.load %arg2[%c0_114, %c0_115] : memref<104x512xf32, #tpu.memory_space<vmem>>, vector<64x512xf32>
    %cst_116 = arith.constant dense<0.000000e+00> : vector<1x512xf32>
    %429 = tpu.matmul %427, %428, %cst_116 {dimension_numbers = #tpu.dot_dimension_numbers<[1], [0], [0], [1], [0, 0, 1, 1], [], []>} : vector<1x64xf32>, vector<64x512xf32>, vector<1x512xf32> -> vector<1x512xf32>
    %430 = arith.addf %426, %429 : vector<1x512xf32>
    %431 = arith.addf %430, %4 : vector<1x512xf32>
    %432 = vector.extract_strided_slice %431 {offsets = [0, 0], sizes = [1, 128], strides = [1, 1]} : vector<1x512xf32> to vector<1x128xf32>
    %433 = arith.negf %432 : vector<1x128xf32>
    %434 = math.exp %433 : vector<1x128xf32>
    %cst_117 = arith.constant 1.000000e+00 : f32
    %435 = vector.broadcast %cst_117 : f32 to vector<1x128xf32>
    %436 = arith.addf %435, %434 : vector<1x128xf32>
    %437 = arith.divf %435, %436 : vector<1x128xf32>
    %438 = vector.extract_strided_slice %431 {offsets = [0, 128], sizes = [1, 128], strides = [1, 1]} : vector<1x512xf32> to vector<1x128xf32>
    %439 = arith.negf %438 : vector<1x128xf32>
    %440 = math.exp %439 : vector<1x128xf32>
    %cst_118 = arith.constant 1.000000e+00 : f32
    %441 = vector.broadcast %cst_118 : f32 to vector<1x128xf32>
    %442 = arith.addf %441, %440 : vector<1x128xf32>
    %443 = arith.divf %441, %442 : vector<1x128xf32>
    %444 = vector.extract_strided_slice %431 {offsets = [0, 256], sizes = [1, 128], strides = [1, 1]} : vector<1x512xf32> to vector<1x128xf32>
    %445 = math.tanh %444 : vector<1x128xf32>
    %446 = vector.extract_strided_slice %431 {offsets = [0, 384], sizes = [1, 128], strides = [1, 1]} : vector<1x512xf32> to vector<1x128xf32>
    %447 = arith.negf %446 : vector<1x128xf32>
    %448 = math.exp %447 : vector<1x128xf32>
    %cst_119 = arith.constant 1.000000e+00 : f32
    %449 = vector.broadcast %cst_119 : f32 to vector<1x128xf32>
    %450 = arith.addf %449, %448 : vector<1x128xf32>
    %451 = arith.divf %449, %450 : vector<1x128xf32>
    %452 = arith.mulf %443, %390 : vector<1x128xf32>
    %453 = arith.mulf %437, %445 : vector<1x128xf32>
    %454 = arith.addf %452, %453 : vector<1x128xf32>
    %455 = math.tanh %454 : vector<1x128xf32>
    %456 = arith.mulf %451, %455 : vector<1x128xf32>
    %c7_i32 = arith.constant 7 : i32
    %457 = arith.index_cast %c7_i32 : i32 to index
    %c0_120 = arith.constant 0 : index
    %458 = vector.load %arg4[%457, %c0_120] : memref<8x512xf32, #tpu.memory_space<vmem>>, vector<1x512xf32>
    %459 = vector.extract_strided_slice %423 {offsets = [0, 0], sizes = [1, 64], strides = [1, 1]} : vector<1x128xf32> to vector<1x64xf32>
    %c8_121 = arith.constant 8 : index
    %c0_122 = arith.constant 0 : index
    %460 = vector.load %arg1[%c8_121, %c0_122] : memref<72x512xf32, #tpu.memory_space<vmem>>, vector<64x512xf32>
    %cst_123 = arith.constant dense<0.000000e+00> : vector<1x512xf32>
    %461 = tpu.matmul %459, %460, %cst_123 {dimension_numbers = #tpu.dot_dimension_numbers<[1], [0], [0], [1], [0, 0, 1, 1], [], []>} : vector<1x64xf32>, vector<64x512xf32>, vector<1x512xf32> -> vector<1x512xf32>
    %462 = arith.addf %458, %461 : vector<1x512xf32>
    %463 = vector.extract_strided_slice %462 {offsets = [0, 0], sizes = [1, 128], strides = [1, 1]} : vector<1x512xf32> to vector<1x128xf32>
    %464 = arith.negf %463 : vector<1x128xf32>
    %465 = math.exp %464 : vector<1x128xf32>
    %cst_124 = arith.constant 1.000000e+00 : f32
    %466 = vector.broadcast %cst_124 : f32 to vector<1x128xf32>
    %467 = arith.addf %466, %465 : vector<1x128xf32>
    %468 = arith.divf %466, %467 : vector<1x128xf32>
    %469 = vector.extract_strided_slice %462 {offsets = [0, 128], sizes = [1, 128], strides = [1, 1]} : vector<1x512xf32> to vector<1x128xf32>
    %470 = arith.negf %469 : vector<1x128xf32>
    %471 = math.exp %470 : vector<1x128xf32>
    %cst_125 = arith.constant 1.000000e+00 : f32
    %472 = vector.broadcast %cst_125 : f32 to vector<1x128xf32>
    %473 = arith.addf %472, %471 : vector<1x128xf32>
    %474 = arith.divf %472, %473 : vector<1x128xf32>
    %475 = vector.extract_strided_slice %462 {offsets = [0, 256], sizes = [1, 128], strides = [1, 1]} : vector<1x512xf32> to vector<1x128xf32>
    %476 = math.tanh %475 : vector<1x128xf32>
    %477 = vector.extract_strided_slice %462 {offsets = [0, 384], sizes = [1, 128], strides = [1, 1]} : vector<1x512xf32> to vector<1x128xf32>
    %478 = arith.negf %477 : vector<1x128xf32>
    %479 = math.exp %478 : vector<1x128xf32>
    %cst_126 = arith.constant 1.000000e+00 : f32
    %480 = vector.broadcast %cst_126 : f32 to vector<1x128xf32>
    %481 = arith.addf %480, %479 : vector<1x128xf32>
    %482 = arith.divf %480, %481 : vector<1x128xf32>
    %483 = arith.mulf %474, %421 : vector<1x128xf32>
    %484 = arith.mulf %468, %476 : vector<1x128xf32>
    %485 = arith.addf %483, %484 : vector<1x128xf32>
    %486 = math.tanh %485 : vector<1x128xf32>
    %487 = arith.mulf %482, %486 : vector<1x128xf32>
    %488 = vector.extract_strided_slice %456 {offsets = [0, 0], sizes = [1, 32], strides = [1, 1]} : vector<1x128xf32> to vector<1x32xf32>
    %c64_127 = arith.constant 64 : index
    %c0_128 = arith.constant 0 : index
    %489 = vector.load %arg2[%c64_127, %c0_128] : memref<104x512xf32, #tpu.memory_space<vmem>>, vector<32x512xf32>
    %cst_129 = arith.constant dense<0.000000e+00> : vector<1x512xf32>
    %490 = tpu.matmul %488, %489, %cst_129 {dimension_numbers = #tpu.dot_dimension_numbers<[1], [0], [0], [1], [0, 0, 1, 1], [], []>} : vector<1x32xf32>, vector<32x512xf32>, vector<1x512xf32> -> vector<1x512xf32>
    %491 = vector.extract_strided_slice %487 {offsets = [0, 0], sizes = [1, 64], strides = [1, 1]} : vector<1x128xf32> to vector<1x64xf32>
    %c0_130 = arith.constant 0 : index
    %c0_131 = arith.constant 0 : index
    %492 = vector.load %arg2[%c0_130, %c0_131] : memref<104x512xf32, #tpu.memory_space<vmem>>, vector<64x512xf32>
    %cst_132 = arith.constant dense<0.000000e+00> : vector<1x512xf32>
    %493 = tpu.matmul %491, %492, %cst_132 {dimension_numbers = #tpu.dot_dimension_numbers<[1], [0], [0], [1], [0, 0, 1, 1], [], []>} : vector<1x64xf32>, vector<64x512xf32>, vector<1x512xf32> -> vector<1x512xf32>
    %494 = arith.addf %490, %493 : vector<1x512xf32>
    %495 = arith.addf %494, %4 : vector<1x512xf32>
    %496 = vector.extract_strided_slice %495 {offsets = [0, 0], sizes = [1, 128], strides = [1, 1]} : vector<1x512xf32> to vector<1x128xf32>
    %497 = arith.negf %496 : vector<1x128xf32>
    %498 = math.exp %497 : vector<1x128xf32>
    %cst_133 = arith.constant 1.000000e+00 : f32
    %499 = vector.broadcast %cst_133 : f32 to vector<1x128xf32>
    %500 = arith.addf %499, %498 : vector<1x128xf32>
    %501 = arith.divf %499, %500 : vector<1x128xf32>
    %502 = vector.extract_strided_slice %495 {offsets = [0, 128], sizes = [1, 128], strides = [1, 1]} : vector<1x512xf32> to vector<1x128xf32>
    %503 = arith.negf %502 : vector<1x128xf32>
    %504 = math.exp %503 : vector<1x128xf32>
    %cst_134 = arith.constant 1.000000e+00 : f32
    %505 = vector.broadcast %cst_134 : f32 to vector<1x128xf32>
    %506 = arith.addf %505, %504 : vector<1x128xf32>
    %507 = arith.divf %505, %506 : vector<1x128xf32>
    %508 = vector.extract_strided_slice %495 {offsets = [0, 256], sizes = [1, 128], strides = [1, 1]} : vector<1x512xf32> to vector<1x128xf32>
    %509 = math.tanh %508 : vector<1x128xf32>
    %510 = vector.extract_strided_slice %495 {offsets = [0, 384], sizes = [1, 128], strides = [1, 1]} : vector<1x512xf32> to vector<1x128xf32>
    %511 = arith.negf %510 : vector<1x128xf32>
    %512 = math.exp %511 : vector<1x128xf32>
    %cst_135 = arith.constant 1.000000e+00 : f32
    %513 = vector.broadcast %cst_135 : f32 to vector<1x128xf32>
    %514 = arith.addf %513, %512 : vector<1x128xf32>
    %515 = arith.divf %513, %514 : vector<1x128xf32>
    %516 = arith.mulf %507, %454 : vector<1x128xf32>
    %517 = arith.mulf %501, %509 : vector<1x128xf32>
    %518 = arith.addf %516, %517 : vector<1x128xf32>
    %519 = math.tanh %518 : vector<1x128xf32>
    %520 = arith.mulf %515, %519 : vector<1x128xf32>
    %c8_i32 = arith.constant 8 : i32
    %521 = vector.extract_strided_slice %520 {offsets = [0, 0], sizes = [1, 32], strides = [1, 1]} : vector<1x128xf32> to vector<1x32xf32>
    %c0_136 = arith.constant 0 : index
    %c0_137 = arith.constant 0 : index
    %522 = vector.load %arg3[%c0_136, %c0_137] : memref<1x32xf32, #tpu.memory_space<vmem>>, vector<1x32xf32>
    tpu.vector_store %arg3[%c0_136, %c0_137], %521 {strides = array<i32>} : memref<1x32xf32, #tpu.memory_space<vmem>>, vector<1x32xf32>,
    return
  }
}

</mosaic_0001>

<bundles_post_ra>
// kernel: tpu_custom_call.1
= control target key start
LH: loop header
LB: loop body
LE: loop exit
PB: predicated region body
PF: predicated region fallthrough
CT: control target
= control target key end

     0   :  { %8 = vsyncpa [#allocation4], 0  ;;  %s6350_s0 = inlined_call_operand.hbm [shape: f32[8,8], index: 0, kind: input, shape index: {}]   ;;  %s6351_s1 = inlined_call_operand.hbm [shape: f32[72,512], index: 1, kind: input, shape index: {}]   ;;  %s6352_s2 = inlined_call_operand.hbm [shape: f32[104,512], index: 2, kind: input, shape index: {}]   ;;  %s6353_s3 = inlined_call_operand.hbm [shape: f32[1,32], index: 3, kind: output, shape index: {}]  }
   0x1   :  { %9 = vsyncpa [#allocation7], 0 }
   0x2   :  { %10 = vsyncpa [#allocation5], 0  ;;  %s5641_s12 = smov [#allocation6]   ;;  %s5547_s16 = scalar_lea.hbm %s6351_s1, 4608 }
   0x3   :  { %s26_s13 = sshll.u32 %s5641_s12, 4  ;;  %p5548_p0 = scmp.ne.s32.totalorder %s6351_s1, %s5547_s16  ;;  %s27_s13 = int_to_ptr.vmem [resolvable:$true] %s26_s13 }
   0x4   :  { %p5551_p1 = scmp.lt.u32.totalorder %s5547_s16, %s6351_s1 }
   0x6   :  { %p5553_p2 = pnand %p5551_p1, %p5548_p0 }
   0x8   :  { %5556 = shalt.err (!%p5553_p2)
}
   0x9   :  { %s5557_s21 = scalar_lea.vmem %s27_s13, 4608  ;;  %p5562_p4 = scmp.lt.s32.totalorder %s27_s13, %s27_s13 }
   0xa   :  { %p5558_p3 = scmp.ne.s32.totalorder %s27_s13, %s5557_s21  ;;  %p5563_p5 = scmp.lt.s32.totalorder %s5557_s21, %s5557_s21 }
   0xc   :  { %p5564_p6 = por %p5563_p5, %p5562_p4 }
   0xe   :  { %p5565_p7 = pnand %p5564_p6, %p5558_p3 }
  0x10   :  { %5568 = shalt.err (!%p5565_p7)
}
  0x11   :  { %s5642_s22 = smov 512   ;;  %s5643_s23 = smov 32  }
  0x12   :  { %32 = dma.hbm_to_vmem [thread:$0]  %s6351_s1, 4608, %s27_s13, [#allocation7], %s5642_s22, %s5642_s22, %s5643_s23  }
  0x13   :  { %s5644_s26 = smov [#allocation3]   ;;  %s5645_s28 = smov [#allocation8]  }
  0x14   :  { %s17_s27 = sshll.u32 %s5644_s26, 4  ;;  %s38_s29 = sshll.u32 %s5645_s28, 4  ;;  %s18_s27 = int_to_ptr.vmem [resolvable:$true] %s17_s27  ;;  %s39_s29 = int_to_ptr.vmem [resolvable:$true] %s38_s29 }
  0x15   :  { %s5569_s5 = scalar_lea.hbm %s6350_s0, 128 }
  0x16   :  { %p5570_p8 = scmp.ne.s32.totalorder %s6350_s0, %s5569_s5  ;;  %p5573_p9 = scmp.lt.u32.totalorder %s5569_s5, %s6350_s0 }
  0x18   :  { %p5575_p10 = pnand %p5573_p9, %p5570_p8 }
  0x1a   :  { %5578 = shalt.err (!%p5575_p10)
}
  0x1b   :  { %s5579_s1 = scalar_lea.vmem %s18_s27, 128  ;;  %p5584_p12 = scmp.lt.s32.totalorder %s18_s27, %s18_s27 }
  0x1c   :  { %p5580_p11 = scmp.ne.s32.totalorder %s18_s27, %s5579_s1  ;;  %p5585_p13 = scmp.lt.s32.totalorder %s5579_s1, %s5579_s1 }
  0x1e   :  { %p5586_p0 = por %p5585_p13, %p5584_p12 }
  0x20   :  { %p5587_p1 = pnand %p5586_p0, %p5580_p11 }
  0x22   :  { %5590 = shalt.err (!%p5587_p1)
}
  0x23   :  { %20 = dma.hbm_to_vmem [thread:$0]  %s6350_s0, 128, %s18_s27, [#allocation4]  }
  0x24   :  { %s5591_s14 = scalar_lea.hbm %s6352_s2, 6656 }
  0x25   :  { %p5592_p2 = scmp.ne.s32.totalorder %s6352_s2, %s5591_s14  ;;  %p5595_p3 = scmp.lt.u32.totalorder %s5591_s14, %s6352_s2 }
  0x27   :  { %p5597_p4 = pnand %p5595_p3, %p5592_p2 }
  0x29   :  { %5600 = shalt.err (!%p5597_p4)
}
  0x2a   :  { %s5601_s19 = scalar_lea.vmem %s39_s29, 6656  ;;  %p5606_p6 = scmp.lt.s32.totalorder %s39_s29, %s39_s29 }
  0x2b   :  { %p5602_p5 = scmp.ne.s32.totalorder %s39_s29, %s5601_s19  ;;  %p5607_p7 = scmp.lt.s32.totalorder %s5601_s19, %s5601_s19 }
  0x2d   :  { %p5608_p8 = por %p5607_p7, %p5606_p6 }
  0x2f   :  { %p5609_p9 = pnand %p5608_p8, %p5602_p5 }
  0x31   :  { %5612 = shalt.err (!%p5609_p9)
}
  0x32   :  { %44 = dma.hbm_to_vmem [thread:$0]  %s6352_s2, 6656, %s39_s29, [#allocation7], %s5642_s22, %s5642_s22, %s5643_s23  }
  0x33   :  { %5635 = dma.done.wait [#allocation4], 128  }
  0x34   :  { %5636 = vsyncadd [#allocation4], 4294967168 }
  0x35   :  { %5637 = dma.done.wait [#allocation7], 11264  }
  0x36   :  { %5638 = vsyncadd [#allocation7], 4294956032  ;;  %v6354_v0 = vmov 0.0   ;;  %v56_v1 = vld [vmem:[#allocation6 + $0x8] sm:$0xff]  ;;  %v58_v2 = vld [vmem:[#allocation6 + $0x18] sm:$0xff]  ;;  %vm59_vm0 = vcmask 64512  }
  0x37   :  { %127 = vmatprep.mubr.f32.mxu0 %v6354_v0  ;;  %198 = vmatprep.mubr.f32.mxu1 %v6354_v0  ;;  %v55_v3 = vld [vmem:[#allocation6] sm:$0xff]  ;;  %v57_v4 = vld [vmem:[#allocation6 + $0x10] sm:$0xff]  ;;  %v54_v5 = vld [vmem:[#allocation3] sm:$0xff]  ;;  %vm244_vm1 = vcmask 523264   ;;  %vm644_vm2 = vcmask 261120   ;;  %s5648_s2 = smov [#allocation9]  }
  0x38   :  { %63 = vmatprep.subr.mxu0 %v56_v1  ;;  %134 = vmatprep.subr.mxu1 %v58_v2  ;;  %v213_v6 = vld [vmem:[#allocation6 + $0x28] sm:$0xff]  ;;  %v215_v8 = vld [vmem:[#allocation6 + $0x38] sm:$0xff]  ;;  %v212_v12 = vld [vmem:[#allocation6 + $0x20] sm:$0xff]  ;;  %s4507_s21 = sshll.u32 %s5648_s2, 4  ;;  %vm4499_vm3 = vcmask 253952   ;;  %s4508_s21 = int_to_ptr.vmem [resolvable:$true] %s4507_s21 }
  0x39   :  { %64 = vmatpush1.msra.mxu0 %v55_v3  ;;  %135 = vmatpush1.msra.mxu1 %v57_v4  ;;  %v217_v7 = vld [vmem:[#allocation6 + $0x48] sm:$0xff]  ;;  %v219_v9 = vld [vmem:[#allocation6 + $0x58] sm:$0xff]  ;;  %v216_v13 = vld [vmem:[#allocation6 + $0x40] sm:$0xff]  ;;  %s5613_s22 = scalar_lea.vmem %s4508_s21, 16  ;;  %s5617_s23 = scalar_lea.vmem %s4508_s21, 32 }
  0x3a   :  { %4517 = vmatmul.mubr.msk.f32.vlgmr.msra.gmra.mrb[0].mxu0 %vm59_vm0, %v54_v5  ;;  %4518 = vmatmul.mubr.msk.f32.vlgmr.msra.gmra.mrb[0].mxu1 %vm59_vm0, %v54_v5  ;;  %v5713_v10 = vpack.c.bf16 %v217_v7, %v213_v6  ;;  %v5715_v11 = vpack.c.bf16 %v219_v9, %v215_v8  ;;  %v214_v14 = vld [vmem:[#allocation6 + $0x30] sm:$0xff]  ;;  %v5717_v15 = vpack.c.bf16 %v216_v13, %v212_v12  ;;  %v221_v17 = vld [vmem:[#allocation6 + $0x68] sm:$0xff]  ;;  %v223_v21 = vld [vmem:[#allocation6 + $0x78] sm:$0xff]  ;;  %p5614_p10 = scmp.ne.s32.totalorder %s4508_s21, %s5613_s22  ;;  %p5618_p11 = scmp.lt.s32.totalorder %s4508_s21, %s4508_s21 }
  0x3b   :  { %v218_v16 = vld [vmem:[#allocation6 + $0x50] sm:$0xff]  ;;  %v225_v18 = vld [vmem:[#allocation6 + $0x88] sm:$0xff]  ;;  %312 = vmatprep.mubr.f32.mxu0 %v6354_v0  ;;  %383 = vmatprep.mubr.f32.mxu1 %v6354_v0  ;;  %v227_v22 = vld [vmem:[#allocation6 + $0x98] sm:$0xff]  ;;  %p5619_p12 = scmp.lt.s32.totalorder %s5617_s23, %s5613_s22 }
  0x3c   :  { %4612 = vmatprep.subr.bf16.mxu0 %v5713_v10  ;;  %4628 = vmatprep.subr.bf16.mxu1 %v5715_v11  ;;  %v5723_v19 = vpack.c.bf16 %v218_v16, %v214_v14  ;;  %v5725_v20 = vpack.c.bf16 %v225_v18, %v221_v17  ;;  %v220_v23 = vld [vmem:[#allocation6 + $0x60] sm:$0xff]  ;;  %v5728_v24 = vpack.c.bf16 %v227_v22, %v223_v21  ;;  %v222_v26 = vld [vmem:[#allocation6 + $0x70] sm:$0xff]  ;;  %v229_v30 = vld [vmem:[#allocation6 + $0xa8] sm:$0xff] }
  0x3d   :  { %4614 = vmatpush1.bf16.msra.mxu0 %v5717_v15  ;;  %v224_v25 = vld [vmem:[#allocation6 + $0x80] sm:$0xff]  ;;  %v226_v27 = vld [vmem:[#allocation6 + $0x90] sm:$0xff]  ;;  %v233_v31 = vld [vmem:[#allocation6 + $0xc8] sm:$0xff]  ;;  %p5620_p13 = por %p5619_p12, %p5618_p11 }
  0x3e   :  { %4630 = vmatpush1.bf16.msra.mxu1 %v5723_v19  ;;  %4616 = vmatprep.subr.bf16.mxu0 %v5725_v20  ;;  %v5732_v28 = vpack.c.bf16 %v224_v25, %v220_v23  ;;  %v5734_v29 = vpack.c.bf16 %v226_v27, %v222_v26  ;;  %v231_v32 = vld [vmem:[#allocation6 + $0xb8] sm:$0xff]  ;;  %v5737_v33 = vpack.c.bf16 %v233_v31, %v229_v30  ;;  %v228_v35 = vld [vmem:[#allocation6 + $0xa0] sm:$0xff]  ;;  %v230_v38 = vld [vmem:[#allocation6 + $0xb0] sm:$0xff] }
  0x3f   :  { %4632 = vmatprep.subr.bf16.mxu1 %v5728_v24  ;;  %v235_v34 = vld [vmem:[#allocation6 + $0xd8] sm:$0xff]  ;;  %v232_v36 = vld [vmem:[#allocation6 + $0xc0] sm:$0xff]  ;;  %v234_v39 = vld [vmem:[#allocation6 + $0xd0] sm:$0xff]  ;;  %p5621_p0 = pnand %p5620_p13, %p5614_p10 }
  0x40   :  { %v5739_v37 = vpack.c.bf16 %v235_v34, %v231_v32  ;;  %v237_v40 = vld [vmem:[#allocation6 + $0xe8] sm:$0xff]  ;;  %v5742_v41 = vpack.c.bf16 %v232_v36, %v228_v35  ;;  %v239_v43 = vld [vmem:[#allocation6 + $0xf8] sm:$0xff]  ;;  %v5746_v45 = vpack.c.bf16 %v234_v39, %v230_v38  ;;  %v236_v47 = vld [vmem:[#allocation6 + $0xe0] sm:$0xff] }
  0x41   :  { %4618 = vmatpush1.bf16.msra.mxu0 %v5732_v28  ;;  %v241_v42 = vld [vmem:[#allocation6 + $0x108] sm:$0xff]  ;;  %v243_v44 = vld [vmem:[#allocation6 + $0x118] sm:$0xff]  ;;  %v240_v48 = vld [vmem:[#allocation6 + $0x100] sm:$0xff] }
  0x42   :  { %4634 = vmatpush1.bf16.msra.mxu1 %v5734_v29  ;;  %4620 = vmatprep.subr.bf16.mxu0 %v5737_v33  ;;  %v5748_v46 = vpack.c.bf16 %v241_v42, %v237_v40  ;;  %v5751_v49 = vpack.c.bf16 %v243_v44, %v239_v43  ;;  %v238_v50 = vld [vmem:[#allocation6 + $0xf0] sm:$0xff]  ;;  %v5754_v52 = vpack.c.bf16 %v240_v48, %v236_v47  ;;  %v468_v54 = vld [vmem:[#allocation8 + $0x8] sm:$0xff]  ;;  %v470_v56 = vld [vmem:[#allocation8 + $0x18] sm:$0xff] }
  0x43   :  { %4636 = vmatprep.subr.bf16.mxu1 %v5739_v37  ;;  %v242_v51 = vld [vmem:[#allocation6 + $0x110] sm:$0xff]  ;;  %v472_v55 = vld [vmem:[#allocation8 + $0x28] sm:$0xff]  ;;  %v474_v58 = vld [vmem:[#allocation8 + $0x38] sm:$0xff] }
  0x44   :  { %v5758_v53 = vpack.c.bf16 %v242_v51, %v238_v50  ;;  %v5767_v57 = vpack.c.bf16 %v472_v55, %v468_v54  ;;  %v467_v59 = vld [vmem:[#allocation8] sm:$0xff]  ;;  %v5769_v61 = vpack.c.bf16 %v474_v58, %v470_v56  ;;  %v469_v63 = vld [vmem:[#allocation8 + $0x10] sm:$0xff]  ;;  %v476_v2 = vld [vmem:[#allocation8 + $0x48] sm:$0xff] }
  0x45   :  { %4622 = vmatpush1.bf16.msra.mxu0 %v5742_v41  ;;  %v471_v60 = vld [vmem:[#allocation8 + $0x20] sm:$0xff]  ;;  %v473_v1 = vld [vmem:[#allocation8 + $0x30] sm:$0xff]  ;;  %v480_v4 = vld [vmem:[#allocation8 + $0x68] sm:$0xff] }
  0x46   :  { %4638 = vmatpush1.bf16.msra.mxu1 %v5746_v45  ;;  %4624 = vmatprep.subr.bf16.mxu0 %v5748_v46  ;;  %v5771_v62 = vpack.c.bf16 %v471_v60, %v467_v59  ;;  %v5774_v3 = vpack.c.bf16 %v473_v1, %v469_v63  ;;  %v478_v5 = vld [vmem:[#allocation8 + $0x58] sm:$0xff]  ;;  %v5778_v7 = vpack.c.bf16 %v480_v4, %v476_v2  ;;  %v475_v9 = vld [vmem:[#allocation8 + $0x40] sm:$0xff]  ;;  %v477_v13 = vld [vmem:[#allocation8 + $0x50] sm:$0xff] }
  0x47   :  { %4640 = vmatprep.subr.bf16.mxu1 %v5751_v49  ;;  %v482_v6 = vld [vmem:[#allocation8 + $0x78] sm:$0xff]  ;;  %v479_v12 = vld [vmem:[#allocation8 + $0x60] sm:$0xff]  ;;  %v481_v16 = vld [vmem:[#allocation8 + $0x70] sm:$0xff] }
  0x48   :  { %v5780_v8 = vpack.c.bf16 %v482_v6, %v478_v5  ;;  %v5783_v14 = vpack.c.bf16 %v479_v12, %v475_v9  ;;  %v484_v17 = vld [vmem:[#allocation8 + $0x88] sm:$0xff]  ;;  %v5787_v21 = vpack.c.bf16 %v481_v16, %v477_v13  ;;  %v486_v23 = vld [vmem:[#allocation8 + $0x98] sm:$0xff]  ;;  %v483_v26 = vld [vmem:[#allocation8 + $0x80] sm:$0xff]  ;;  %v5647_v6 = vmov 1966171168  }
  0x49   :  { %4626 = vmatpush1.bf16.msra.mxu0 %v5754_v52  ;;  %v488_v18 = vld [vmem:[#allocation8 + $0xa8] sm:$0xff]  ;;  %v490_v25 = vld [vmem:[#allocation8 + $0xb8] sm:$0xff]  ;;  %v487_v30 = vld [vmem:[#allocation8 + $0xa0] sm:$0xff]  ;;  %v397_v9 = vunpack.c.l.s4 %v5647_v6  ;;  %v399_v12 = vlaneseq }
  0x4a   :  { %4642 = vmatpush1.bf16.msra.mxu1 %v5758_v53  ;;  %4644 = vmatprep.subr.bf16.mxu0 %v5767_v57  ;;  %v5789_v22 = vpack.c.bf16 %v488_v18, %v484_v17  ;;  %v5791_v27 = vpack.c.bf16 %v490_v25, %v486_v23  ;;  %v485_v31 = vld [vmem:[#allocation8 + $0x90] sm:$0xff]  ;;  %v5794_v34 = vpack.c.bf16 %v487_v30, %v483_v26  ;;  %v492_v35 = vld [vmem:[#allocation8 + $0xc8] sm:$0xff]  ;;  %v494_v38 = vld [vmem:[#allocation8 + $0xd8] sm:$0xff] }
  0x4b   :  { %4660 = vmatprep.subr.bf16.mxu1 %v5769_v61  ;;  %v489_v32 = vld [vmem:[#allocation8 + $0xb0] sm:$0xff]  ;;  %v496_v36 = vld [vmem:[#allocation8 + $0xe8] sm:$0xff]  ;;  %v498_v42 = vld [vmem:[#allocation8 + $0xf8] sm:$0xff]  ;;  %v398_v13 = vunpack.c.0.s8 %v397_v9  ;;  %v5821_v16 = vshrl.u32 %v399_v12, 7 }
  0x4c   :  { %313 = vmatmul.mubr.f32.vlgmr.msra.gmra.mrb[2].mxu0 %v6354_v0  ;;  %v5798_v39 = vpack.c.bf16 %v489_v32, %v485_v31  ;;  %v5800_v40 = vpack.c.bf16 %v496_v36, %v492_v35  ;;  %v491_v43 = vld [vmem:[#allocation8 + $0xc0] sm:$0xff]  ;;  %v5803_v47 = vpack.c.bf16 %v498_v42, %v494_v38  ;;  %v493_v48 = vld [vmem:[#allocation8 + $0xd0] sm:$0xff]  ;;  %v452_v51 = vld [vmem:[#allocation8 + $0x108] sm:$0xff] }
  0x4d   :  { %384 = vmatmul.mubr.f32.vlgmr.msra.gmra.mrb[2].mxu1 %v6354_v0  ;;  %566 = vmatprep.mubr.f32.mxu0 %v6354_v0  ;;  %v495_v44 = vld [vmem:[#allocation8 + $0xe0] sm:$0xff]  ;;  %v497_v50 = vld [vmem:[#allocation8 + $0xf0] sm:$0xff]  ;;  %v456_v54 = vld [vmem:[#allocation8 + $0x128] sm:$0xff]  ;;  %v5824_v18 = vsub.s32 %v398_v13, %v5821_v16 }
  0x4e   :  { %637 = vmatprep.mubr.f32.mxu1 %v6354_v0  ;;  %4646 = vmatpush1.bf16.msra.mxu0 %v5771_v62  ;;  %v454_v55 = vld [vmem:[#allocation8 + $0x118] sm:$0xff]  ;;  %v5806_v58 = vpack.c.bf16 %v495_v44, %v491_v43  ;;  %v5810_v59 = vpack.c.bf16 %v497_v50, %v493_v48  ;;  %v5812_v60 = vpack.c.bf16 %v456_v54, %v452_v51 }
  0x4f   :  { %4662 = vmatpush1.bf16.msra.mxu1 %v5774_v3  ;;  %4648 = vmatprep.subr.bf16.mxu0 %v5778_v7  ;;  %v458_v56 = vld [vmem:[#allocation8 + $0x138] sm:$0xff] }
  0x50   :  { %4664 = vmatprep.subr.bf16.mxu1 %v5780_v8  ;;  %6366 = vst [vmem:[#allocation13_spill] sm:$0xff] %v5812_v60  ;;  %v5815_v63 = vpack.c.bf16 %v458_v56, %v454_v55 }
  0x52   :  { %4650 = vmatpush1.bf16.msra.mxu0 %v5783_v14  ;;  %6367 = vst [vmem:[#allocation14_spill] sm:$0xff] %v5815_v63 }
  0x53   :  { %4666 = vmatpush1.bf16.msra.mxu1 %v5787_v21  ;;  %4652 = vmatprep.subr.bf16.mxu0 %v5789_v22 }
  0x54   :  { %4668 = vmatprep.subr.bf16.mxu1 %v5791_v27 }
  0x56   :  { %4654 = vmatpush1.bf16.msra.mxu0 %v5794_v34 }
  0x57   :  { %4670 = vmatpush1.bf16.msra.mxu1 %v5798_v39  ;;  %4656 = vmatprep.subr.bf16.mxu0 %v5800_v40 }
  0x58   :  { %4672 = vmatprep.subr.bf16.mxu1 %v5803_v47 }
  0x5a   :  { %4658 = vmatpush1.bf16.msra.mxu0 %v5806_v58 }
  0x5b   :  { %4674 = vmatpush1.bf16.msra.mxu1 %v5810_v59  ;;  %4676 = vmatprep.subr.bf16.mxu0 %v5812_v60 }
  0x5c   :  { %4684 = vmatprep.subr.bf16.mxu1 %v5815_v63 }
 0x10d   :  { %v129_v1 = vpop.f32.mrb[0].mxu0  ;;  %v200_v2 = vpop.f32.mrb[0].mxu1 }
 0x10e   :  { %205 = vst [vmem:[#allocation2] sm:$0xff] %v129_v1  ;;  %207 = vst [vmem:[#allocation2 + $0x10] sm:$0xff] %v200_v2  ;;  %v131_v4 = vpop.f32.mrb[1].mxu0  ;;  %v202_v5 = vpop.f32.mrb[1].mxu1 }
 0x10f   :  { %206 = vst [vmem:[#allocation2 + $0x8] sm:$0xff] %v131_v4  ;;  %208 = vst [vmem:[#allocation2 + $0x18] sm:$0xff] %v202_v5 }
 0x116   :  { %v211_v42 = vld [vmem:[#allocation2] ss:$8 sm:$0xf] }
 0x11f   :  { %v314_v17 = vpop.f32.mrb[2].mxu0 }
 0x120   :  { %v385_v23 = vpop.f32.mrb[2].mxu1  ;;  %v316_v25 = vpop.f32.mrb[3].mxu0 }
 0x121   :  { %v394_v26 = vcombine.low %v314_v17, %v316_v25  ;;  %v387_v30 = vpop.f32.mrb[3].mxu1 }
 0x122   :  { %v395_v31 = vcombine.low %v385_v23, %v387_v30  ;;  %v455_v30 = vld [vmem:[#allocation8 + $0x120] sm:$0xff] }
 0x123   :  { %v402_v32 = vrot.slane %v394_v26, %v5824_v18  ;;  %v451_v26 = vld [vmem:[#allocation8 + $0x100] sm:$0xff] }
 0x124   :  { %v409_v35 = vrot.slane %v395_v31, %v5824_v18  ;;  %v453_v31 = vld [vmem:[#allocation8 + $0x110] sm:$0xff] }
 0x126   :  { %v410_v36 = vcombine.low %v402_v32, %v409_v35  ;;  %v457_v32 = vld [vmem:[#allocation8 + $0x130] sm:$0xff]  ;;  %v460_v35 = vld [vmem:[#allocation8 + $0x148] sm:$0xff] }
 0x128   :  { %v417_v38 = vrot.slane %v410_v36, %v5824_v18  ;;  %v464_v36 = vld [vmem:[#allocation8 + $0x168] sm:$0xff] }
 0x12a   :  { %v419_v43 = vadd.f32 %v417_v38, %v211_v42  ;;  %v462_v38 = vld [vmem:[#allocation8 + $0x158] sm:$0xff] }
 0x12b   :  { %v466_v42 = vld [vmem:[#allocation8 + $0x178] sm:$0xff] }
 0x12c   :  { %v4519_v44 = vmul.f32 -1.442695, %v419_v43  ;;  %v427_v48 = vrot.slane %v419_v43, 1  ;;  %v438_v51 = vrot.slane %v419_v43, 3  ;;  %v435_v56 = vrot.slane %v419_v43, 2 }
 0x12e   :  { %5291 = vpow2.f32 %v4519_v44  ;;  %v4520_v50 = vmul.f32 -1.442695, %v427_v48  ;;  %v4521_v54 = vmul.f32 -1.442695, %v438_v51  ;;  %v5832_v48 = vpack.c.bf16 %v455_v30, %v451_v26  ;;  %v459_v51 = vld [vmem:[#allocation8 + $0x140] sm:$0xff] }
 0x130   :  { %5293 = vpow2.f32 %v4520_v50  ;;  %v5834_v50 = vpack.c.bf16 %v457_v32, %v453_v31 }
 0x131   :  { %5295 = vpow2.f32 %v4521_v54 }
 0x138   :  { %v5292_v55 = vpop.eup %5291 }
 0x139   :  { %v423_v1 = vadd.f32 1.0, %v5292_v55  ;;  %v5836_v55 = vpack.c.bf16 %v464_v36, %v460_v35 }
 0x13a   :  { %v5294_v2 = vpop.eup %5293 }
 0x13b   :  { %5297 = vrcp.f32 %v423_v1  ;;  %v432_v4 = vadd.f32 1.0, %v5294_v2  ;;  %v5296_v5 = vpop.eup %5295  ;;  %v463_v1 = vld [vmem:[#allocation8 + $0x160] sm:$0xff]  ;;  %v461_v2 = vld [vmem:[#allocation8 + $0x150] sm:$0xff] }
 0x13c   :  { %5299 = vtanh.f32 %v435_v56  ;;  %v443_v13 = vadd.f32 1.0, %v5296_v5  ;;  %v5838_v56 = vpack.c.bf16 %v466_v42, %v462_v38  ;;  %v5844_v5 = vpack.c.bf16 %v463_v1, %v459_v51 }
 0x13d   :  { %5301 = vrcp.f32 %v432_v4  ;;  %v465_v4 = vld [vmem:[#allocation8 + $0x170] sm:$0xff] }
 0x13e   :  { %5303 = vrcp.f32 %v443_v13  ;;  %v796_v13 = vsub.s32 1, %v5821_v16 }
 0x145   :  { %v5298_v6 = vpop.eup %5297 }
 0x146   :  { %v5300_v9 = vpop.eup %5299 }
 0x147   :  { %v5302_v12 = vpop.eup %5301  ;;  %v447_v23 = vmul.f32 %v5300_v9, %v5298_v6  ;;  %v5846_v6 = vpack.c.bf16 %v465_v4, %v461_v2  ;;  %v792_v9 = vsub.s32 0, %v5821_v16 }
 0x148   :  { %v446_v17 = vmul.f32 0.0, %v5302_v12  ;;  %v5304_v43 = vpop.eup %5303  ;;  %v210_v12 = vld [vmem:[#allocation8 + $0x180] ss:$8 sm:$0xf] }
 0x14a   :  { %v5829_v25 = vadd.f32 %v447_v23, %v446_v17  ;;  %v5898_v17 = vrot.slane %v210_v12, %v792_v9  ;;  %v5900_v23 = vrot.slane %v210_v12, %v796_v13 }
 0x14c   :  { %5305 = vtanh.f32 %v5829_v25  ;;  %6368 = vst [vmem:[#allocation15_spill] sm:$0xff] %v5898_v17  ;;  %6369 = vst [vmem:[#allocation16_spill] sm:$0xff] %v5900_v23 }
 0x156   :  { %v5306_v44 = vpop.eup %5305 }
 0x157   :  { %v450_v54 = vmul.f32 %v5306_v44, %v5304_v43  ;;  %v800_v43 = vsub.s32 2, %v5821_v16 }
 0x159   :  { %4522 = vmatmul.mubr.msk.f32.vlgmr.msra.gmra.mrb[4].mxu0 %vm244_vm1, %v450_v54  ;;  %4523 = vmatmul.mubr.msk.f32.vlgmr.msra.gmra.mrb[4].mxu1 %vm244_vm1, %v450_v54  ;;  %v5905_v44 = vrot.slane %v210_v12, %v800_v43  ;;  %v839_v43 = vld [vmem:[#allocation2 + $0x1] ss:$8 sm:$0xf] }
 0x15a   :  { %4678 = vmatpush1.bf16.msra.mxu0 %v5832_v48  ;;  %4686 = vmatpush1.bf16.msra.mxu1 %v5834_v50 }
 0x15b   :  { %4680 = vmatprep.subr.bf16.mxu0 %v5836_v55  ;;  %4688 = vmatprep.subr.bf16.mxu1 %v5838_v56  ;;  %6370 = vst [vmem:[#allocation17_spill] sm:$0xff] %v5905_v44 }
 0x15c   :  { %711 = vmatprep.mubr.f32.mxu0 %v6354_v0  ;;  %782 = vmatprep.mubr.f32.mxu1 %v6354_v0 }
 0x15e   :  { %4682 = vmatpush1.bf16.msra.mxu0 %v5844_v5  ;;  %4690 = vmatpush1.bf16.msra.mxu1 %v5846_v6 }
 0x15f   :  { %4692 = vmatprep.subr.bf16.mxu0 %v5713_v10  ;;  %4708 = vmatprep.subr.bf16.mxu1 %v5715_v11 }
 0x161   :  { %712 = vmatmul.mubr.f32.vlgmr.msra.gmra.mrb[4].mxu0 %v6354_v0  ;;  %783 = vmatmul.mubr.f32.vlgmr.msra.gmra.mrb[4].mxu1 %v6354_v0 }
 0x162   :  { %4694 = vmatpush1.bf16.msra.mxu0 %v5717_v15  ;;  %4710 = vmatpush1.bf16.msra.mxu1 %v5723_v19 }
 0x163   :  { %4696 = vmatprep.subr.bf16.mxu0 %v5725_v20  ;;  %4712 = vmatprep.subr.bf16.mxu1 %v5728_v24 }
 0x164   :  { %904 = vmatprep.mubr.f32.mxu0 %v6354_v0  ;;  %975 = vmatprep.mubr.f32.mxu1 %v6354_v0 }
 0x166   :  { %4698 = vmatpush1.bf16.msra.mxu0 %v5732_v28  ;;  %4714 = vmatpush1.bf16.msra.mxu1 %v5734_v29 }
 0x167   :  { %4700 = vmatprep.subr.bf16.mxu0 %v5737_v33  ;;  %4716 = vmatprep.subr.bf16.mxu1 %v5739_v37 }
 0x16a   :  { %4702 = vmatpush1.bf16.msra.mxu0 %v5742_v41  ;;  %4718 = vmatpush1.bf16.msra.mxu1 %v5746_v45 }
 0x16b   :  { %4704 = vmatprep.subr.bf16.mxu0 %v5748_v46  ;;  %4720 = vmatprep.subr.bf16.mxu1 %v5751_v49 }
 0x16e   :  { %4706 = vmatpush1.bf16.msra.mxu0 %v5754_v52  ;;  %4722 = vmatpush1.bf16.msra.mxu1 %v5758_v53 }
 0x16f   :  { %4724 = vmatprep.subr.bf16.mxu0 %v5767_v57  ;;  %4740 = vmatprep.subr.bf16.mxu1 %v5769_v61 }
 0x171   :  { %4527 = vmatmul.mubr.msk.f32.vlgmr.msra.gmra.mrb[6].mxu0 %vm244_vm1, %v450_v54  ;;  %4528 = vmatmul.mubr.msk.f32.vlgmr.msra.gmra.mrb[6].mxu1 %vm244_vm1, %v450_v54 }
 0x172   :  { %4726 = vmatpush1.bf16.msra.mxu0 %v5771_v62  ;;  %4742 = vmatpush1.bf16.msra.mxu1 %v5774_v3 }
 0x173   :  { %4728 = vmatprep.subr.bf16.mxu0 %v5778_v7  ;;  %4744 = vmatprep.subr.bf16.mxu1 %v5780_v8 }
 0x174   :  { %1110 = vmatprep.mubr.f32.mxu0 %v6354_v0  ;;  %1181 = vmatprep.mubr.f32.mxu1 %v6354_v0 }
 0x176   :  { %4730 = vmatpush1.bf16.msra.mxu0 %v5783_v14  ;;  %4746 = vmatpush1.bf16.msra.mxu1 %v5787_v21 }
 0x177   :  { %4732 = vmatprep.subr.bf16.mxu0 %v5789_v22  ;;  %4748 = vmatprep.subr.bf16.mxu1 %v5791_v27 }
 0x17a   :  { %4734 = vmatpush1.bf16.msra.mxu0 %v5794_v34  ;;  %4750 = vmatpush1.bf16.msra.mxu1 %v5798_v39 }
 0x17b   :  { %4736 = vmatprep.subr.bf16.mxu0 %v5800_v40  ;;  %4752 = vmatprep.subr.bf16.mxu1 %v5803_v47 }
 0x17e   :  { %4738 = vmatpush1.bf16.msra.mxu0 %v5806_v58  ;;  %4754 = vmatpush1.bf16.msra.mxu1 %v5810_v59 }
 0x17f   :  { %4756 = vmatprep.subr.bf16.mxu0 %v5812_v60  ;;  %4764 = vmatprep.subr.bf16.mxu1 %v5815_v63 }
 0x234   :  { %v713_v26 = vpop.f32.mrb[4].mxu0  ;;  %v784_v30 = vpop.f32.mrb[4].mxu1 }
 0x235   :  { %v810_v31 = vadd.f32 %v5898_v17, %v713_v26  ;;  %v715_v32 = vpop.f32.mrb[5].mxu0  ;;  %v786_v35 = vpop.f32.mrb[5].mxu1  ;;  %v812_v51 = vadd.f32 %v5905_v44, %v784_v30 }
 0x236   :  { %v811_v36 = vadd.f32 %v5900_v23, %v715_v32 }
 0x237   :  { %v4524_v38 = vmul.f32 -1.442695, %v810_v31 }
 0x238   :  { %v4525_v42 = vmul.f32 -1.442695, %v811_v36 }
 0x239   :  { %5307 = vpow2.f32 %v4524_v38 }
 0x23a   :  { %5309 = vpow2.f32 %v4525_v42 }
 0x23b   :  { %5311 = vtanh.f32 %v812_v51 }
 0x243   :  { %v5308_v54 = vpop.eup %5307 }
 0x244   :  { %v5310_v1 = vpop.eup %5309  ;;  %v817_v2 = vadd.f32 1.0, %v5308_v54  ;;  %v906_v4 = vpop.f32.mrb[6].mxu0 }
 0x245   :  { %v977_v9 = vpop.f32.mrb[6].mxu1  ;;  %v823_v13 = vadd.f32 1.0, %v5310_v1  ;;  %v908_v26 = vpop.f32.mrb[7].mxu0 }
 0x246   :  { %v979_v0 = vpop.f32.mrb[7].mxu1  ;;  %5313 = vrcp.f32 %v817_v2  ;;  %v986_v31 = vcombine.low %v906_v4, %v908_v26  ;;  %v5312_v54 = vpop.eup %5311 }
 0x247   :  { %v987_v32 = vcombine.low %v977_v9, %v979_v0  ;;  %5315 = vrcp.f32 %v823_v13  ;;  %v804_v9 = vsub.s32 3, %v5821_v16 }
 0x248   :  { %v994_v36 = vrot.slane %v986_v31, %v5824_v18 }
 0x249   :  { %v1001_v38 = vrot.slane %v987_v32, %v5824_v18  ;;  %v5914_v26 = vrot.slane %v210_v12, %v804_v9  ;;  %v6371_v9 = vmov 0.0  }
 0x24b   :  { %v1002_v42 = vcombine.low %v994_v36, %v1001_v38 }
 0x24d   :  { %v1009_v30 = vrot.slane %v1002_v42, %v5824_v18  ;;  %v813_v42 = vadd.f32 %v5914_v26, %v786_v35 }
 0x24f   :  { %v1011_v44 = vadd.f32 %v1009_v30, %v839_v43 }
 0x250   :  { %v5314_v23 = vpop.eup %5313 }
 0x251   :  { %v4529_v17 = vmul.f32 -1.442695, %v1011_v44  ;;  %v1019_v51 = vrot.slane %v1011_v44, 1  ;;  %v5316_v1 = vpop.eup %5315  ;;  %v834_v63 = vmul.f32 %v5314_v23, %v5312_v54  ;;  %v1030_v4 = vrot.slane %v1011_v44, 3 }
 0x252   :  { %v833_v60 = vmul.f32 0.0, %v5316_v1  ;;  %v1027_v32 = vrot.slane %v1011_v44, 2 }
 0x253   :  { %5317 = vpow2.f32 %v4529_v17  ;;  %v4530_v2 = vmul.f32 -1.442695, %v1019_v51  ;;  %v4531_v13 = vmul.f32 -1.442695, %v1030_v4 }
 0x254   :  { %v5911_v0 = vadd.f32 %v834_v63, %v833_v60  ;;  %v4526_v60 = vmul.f32 -1.442695, %v813_v42 }
 0x255   :  { %5319 = vpow2.f32 %v4530_v2 }
 0x256   :  { %5321 = vpow2.f32 %v4531_v13 }
 0x25d   :  { %v5318_v31 = vpop.eup %5317 }
 0x25e   :  { %v1015_v36 = vadd.f32 1.0, %v5318_v31 }
 0x25f   :  { %v5320_v38 = vpop.eup %5319 }
 0x260   :  { %5323 = vrcp.f32 %v1015_v36  ;;  %v1024_v23 = vadd.f32 1.0, %v5320_v38  ;;  %v5322_v63 = vpop.eup %5321  ;;  %v6373_v36 = vld [vmem:[#allocation14_spill] sm:$0xff] }
 0x261   :  { %5325 = vtanh.f32 %v1027_v32  ;;  %v1035_v43 = vadd.f32 1.0, %v5322_v63  ;;  %v6372_v32 = vld [vmem:[#allocation13_spill] sm:$0xff] }
 0x262   :  { %5327 = vrcp.f32 %v1024_v23  ;;  %v6374_v23 = vld [vmem:[#allocation15_spill] sm:$0xff] }
 0x263   :  { %5329 = vpow2.f32 %v4526_v60 }
 0x264   :  { %5331 = vrcp.f32 %v1035_v43 }
 0x26a   :  { %v5324_v17 = vpop.eup %5323 }
 0x26b   :  { %v5326_v30 = vpop.eup %5325 }
 0x26c   :  { %v5328_v16 = vpop.eup %5327  ;;  %v1039_v54 = vmul.f32 %v5326_v30, %v5324_v17  ;;  %v6375_v30 = vld [vmem:[#allocation16_spill] sm:$0xff] }
 0x26d   :  { %v1038_v12 = vmul.f32 %v5328_v16, %v5829_v25  ;;  %v5330_v35 = vpop.eup %5329 }
 0x26e   :  { %v830_v51 = vadd.f32 1.0, %v5330_v35  ;;  %v5332_v1 = vpop.eup %5331 }
 0x26f   :  { %v5918_v44 = vadd.f32 %v1039_v54, %v1038_v12  ;;  %v6376_v54 = vld [vmem:[#allocation17_spill] sm:$0xff] }
 0x271   :  { %5333 = vtanh.f32 %v5918_v44 }
 0x272   :  { %5335 = vtanh.f32 %v5911_v0 }
 0x273   :  { %5337 = vrcp.f32 %v830_v51 }
 0x27b   :  { %v5334_v2 = vpop.eup %5333 }
 0x27c   :  { %v1042_v4 = vmul.f32 %v5334_v2, %v5332_v1  ;;  %v5336_v25 = vpop.eup %5335 }
 0x27d   :  { %v5338_v13 = vpop.eup %5337 }
 0x27e   :  { %4532 = vmatmul.mubr.msk.f32.vlgmr.msra.gmra.mrb[8].mxu0 %vm244_vm1, %v1042_v4  ;;  %4533 = vmatmul.mubr.msk.f32.vlgmr.msra.gmra.mrb[8].mxu1 %vm244_vm1, %v1042_v4  ;;  %v837_v31 = vmul.f32 %v5338_v13, %v5336_v25 }
 0x27f   :  { %4758 = vmatpush1.bf16.msra.mxu0 %v5832_v48  ;;  %4766 = vmatpush1.bf16.msra.mxu1 %v5834_v50 }
 0x280   :  { %4760 = vmatprep.subr.bf16.mxu0 %v5836_v55  ;;  %4768 = vmatprep.subr.bf16.mxu1 %v5838_v56 }
 0x281   :  { %1255 = vmatprep.mubr.f32.mxu0 %v6371_v9  ;;  %1326 = vmatprep.mubr.f32.mxu1 %v6371_v9 }
 0x283   :  { %4762 = vmatpush1.bf16.msra.mxu0 %v5844_v5  ;;  %4770 = vmatpush1.bf16.msra.mxu1 %v5846_v6 }
 0x284   :  { %4772 = vmatprep.subr.bf16.mxu0 %v5713_v10  ;;  %4788 = vmatprep.subr.bf16.mxu1 %v5715_v11 }
 0x286   :  { %4534 = vmatmul.mubr.msk.f32.vlgmr.msra.gmra.mrb[8].mxu0 %vm644_vm2, %v837_v31  ;;  %4535 = vmatmul.mubr.msk.f32.vlgmr.msra.gmra.mrb[8].mxu1 %vm644_vm2, %v837_v31 }
 0x287   :  { %4774 = vmatpush1.bf16.msra.mxu0 %v5717_v15  ;;  %4790 = vmatpush1.bf16.msra.mxu1 %v5723_v19 }
 0x288   :  { %4776 = vmatprep.subr.bf16.mxu0 %v5725_v20  ;;  %4792 = vmatprep.subr.bf16.mxu1 %v5728_v24 }
 0x289   :  { %1427 = vmatprep.mubr.f32.mxu0 %v6371_v9  ;;  %1498 = vmatprep.mubr.f32.mxu1 %v6371_v9 }
 0x28b   :  { %4778 = vmatpush1.bf16.msra.mxu0 %v5732_v28  ;;  %4794 = vmatpush1.bf16.msra.mxu1 %v5734_v29 }
 0x28c   :  { %4780 = vmatprep.subr.bf16.mxu0 %v5737_v33  ;;  %4796 = vmatprep.subr.bf16.mxu1 %v5739_v37 }
 0x28f   :  { %4782 = vmatpush1.bf16.msra.mxu0 %v5742_v41  ;;  %4798 = vmatpush1.bf16.msra.mxu1 %v5746_v45 }
 0x290   :  { %4784 = vmatprep.subr.bf16.mxu0 %v5748_v46  ;;  %4800 = vmatprep.subr.bf16.mxu1 %v5751_v49 }
 0x293   :  { %4786 = vmatpush1.bf16.msra.mxu0 %v5754_v52  ;;  %4802 = vmatpush1.bf16.msra.mxu1 %v5758_v53 }
 0x294   :  { %4804 = vmatprep.subr.bf16.mxu0 %v5767_v57  ;;  %4820 = vmatprep.subr.bf16.mxu1 %v5769_v61 }
 0x296   :  { %4539 = vmatmul.mubr.msk.f32.vlgmr.msra.gmra.mrb[10].mxu0 %vm244_vm1, %v1042_v4  ;;  %4540 = vmatmul.mubr.msk.f32.vlgmr.msra.gmra.mrb[10].mxu1 %vm244_vm1, %v1042_v4 }
 0x297   :  { %4806 = vmatpush1.bf16.msra.mxu0 %v5771_v62  ;;  %4822 = vmatpush1.bf16.msra.mxu1 %v5774_v3 }
 0x298   :  { %4808 = vmatprep.subr.bf16.mxu0 %v5778_v7  ;;  %4824 = vmatprep.subr.bf16.mxu1 %v5780_v8 }
 0x299   :  { %1633 = vmatprep.mubr.f32.mxu0 %v6371_v9  ;;  %1704 = vmatprep.mubr.f32.mxu1 %v6371_v9 }
 0x29b   :  { %4810 = vmatpush1.bf16.msra.mxu0 %v5783_v14  ;;  %4826 = vmatpush1.bf16.msra.mxu1 %v5787_v21 }
 0x29c   :  { %4812 = vmatprep.subr.bf16.mxu0 %v5789_v22  ;;  %4828 = vmatprep.subr.bf16.mxu1 %v5791_v27 }
 0x29f   :  { %4814 = vmatpush1.bf16.msra.mxu0 %v5794_v34  ;;  %4830 = vmatpush1.bf16.msra.mxu1 %v5798_v39 }
 0x2a0   :  { %4816 = vmatprep.subr.bf16.mxu0 %v5800_v40  ;;  %4832 = vmatprep.subr.bf16.mxu1 %v5803_v47 }
 0x2a3   :  { %4818 = vmatpush1.bf16.msra.mxu0 %v5806_v58  ;;  %4834 = vmatpush1.bf16.msra.mxu1 %v5810_v59 }
 0x2a4   :  { %4836 = vmatprep.subr.bf16.mxu0 %v6372_v32  ;;  %4844 = vmatprep.subr.bf16.mxu1 %v6373_v36 }
 0x359   :  { %v1257_v38 = vpop.f32.mrb[8].mxu0  ;;  %v1328_v42 = vpop.f32.mrb[8].mxu1 }
 0x35a   :  { %v1333_v60 = vadd.f32 %v1257_v38, %v6374_v23  ;;  %v1259_v63 = vpop.f32.mrb[9].mxu0  ;;  %v1330_v17 = vpop.f32.mrb[9].mxu1  ;;  %v1335_v35 = vadd.f32 %v1328_v42, %v6376_v54 }
 0x35b   :  { %v1334_v16 = vadd.f32 %v1259_v63, %v6375_v30 }
 0x35c   :  { %v4536_v43 = vmul.f32 -1.442695, %v1333_v60 }
 0x35d   :  { %v4537_v12 = vmul.f32 -1.442695, %v1334_v16 }
 0x35e   :  { %5339 = vpow2.f32 %v4536_v43  ;;  %v1362_v43 = vld [vmem:[#allocation2 + $0x2] ss:$8 sm:$0xf] }
 0x35f   :  { %5341 = vpow2.f32 %v4537_v12 }
 0x360   :  { %5343 = vtanh.f32 %v1335_v35 }
 0x368   :  { %v5340_v51 = vpop.eup %5339 }
 0x369   :  { %v5342_v1 = vpop.eup %5341  ;;  %v1340_v2 = vadd.f32 1.0, %v5340_v51  ;;  %v1429_v4 = vpop.f32.mrb[10].mxu0 }
 0x36a   :  { %v1500_v25 = vpop.f32.mrb[10].mxu1  ;;  %v1346_v13 = vadd.f32 1.0, %v5342_v1  ;;  %v1431_v31 = vpop.f32.mrb[11].mxu0 }
 0x36b   :  { %v1502_v36 = vpop.f32.mrb[11].mxu1  ;;  %5345 = vrcp.f32 %v1340_v2  ;;  %v1509_v38 = vcombine.low %v1429_v4, %v1431_v31  ;;  %v5344_v51 = vpop.eup %5343 }
 0x36c   :  { %v1510_v23 = vcombine.low %v1500_v25, %v1502_v36  ;;  %5347 = vrcp.f32 %v1346_v13 }
 0x36d   :  { %v1517_v60 = vrot.slane %v1509_v38, %v5824_v18 }
 0x36e   :  { %v1524_v63 = vrot.slane %v1510_v23, %v5824_v18 }
 0x370   :  { %v1525_v16 = vcombine.low %v1517_v60, %v1524_v63  ;;  %v1336_v63 = vadd.f32 %v1330_v17, %v5914_v26 }
 0x372   :  { %v1532_v42 = vrot.slane %v1525_v16, %v5824_v18 }
 0x374   :  { %v1534_v12 = vadd.f32 %v1532_v42, %v1362_v43 }
 0x375   :  { %v5346_v54 = vpop.eup %5345 }
 0x376   :  { %v4541_v30 = vmul.f32 -1.442695, %v1534_v12  ;;  %v1542_v35 = vrot.slane %v1534_v12, 1  ;;  %v5348_v1 = vpop.eup %5347  ;;  %v1357_v32 = vmul.f32 %v5346_v54, %v5344_v51  ;;  %v1553_v25 = vrot.slane %v1534_v12, 3 }
 0x377   :  { %v1356_v2 = vmul.f32 %v5348_v1, %v5911_v0  ;;  %v1550_v31 = vrot.slane %v1534_v12, 2  ;;  %v4538_v54 = vmul.f32 -1.442695, %v1336_v63 }
 0x378   :  { %5349 = vpow2.f32 %v4541_v30  ;;  %v4542_v36 = vmul.f32 -1.442695, %v1542_v35  ;;  %v4543_v23 = vmul.f32 -1.442695, %v1553_v25 }
 0x379   :  { %v5981_v4 = vadd.f32 %v1357_v32, %v1356_v2 }
 0x37a   :  { %5351 = vpow2.f32 %v4542_v36 }
 0x37b   :  { %5353 = vpow2.f32 %v4543_v23 }
 0x382   :  { %v5350_v13 = vpop.eup %5349 }
 0x383   :  { %v1538_v38 = vadd.f32 1.0, %v5350_v13 }
 0x384   :  { %v5352_v60 = vpop.eup %5351 }
 0x385   :  { %5355 = vrcp.f32 %v1538_v38  ;;  %v1547_v16 = vadd.f32 1.0, %v5352_v60  ;;  %v5354_v0 = vpop.eup %5353  ;;  %v6378_v38 = vld [vmem:[#allocation14_spill] sm:$0xff] }
 0x386   :  { %5357 = vtanh.f32 %v1550_v31  ;;  %v1558_v43 = vadd.f32 1.0, %v5354_v0  ;;  %v6377_v31 = vld [vmem:[#allocation13_spill] sm:$0xff] }
 0x387   :  { %5359 = vrcp.f32 %v1547_v16  ;;  %v6379_v16 = vld [vmem:[#allocation15_spill] sm:$0xff] }
 0x388   :  { %5361 = vpow2.f32 %v4538_v54 }
 0x389   :  { %5363 = vrcp.f32 %v1558_v43 }
 0x38f   :  { %v5356_v30 = vpop.eup %5355 }
 0x390   :  { %v5358_v32 = vpop.eup %5357 }
 0x391   :  { %v5360_v42 = vpop.eup %5359  ;;  %v1562_v35 = vmul.f32 %v5358_v32, %v5356_v30  ;;  %v6380_v32 = vld [vmem:[#allocation16_spill] sm:$0xff] }
 0x392   :  { %v1561_v51 = vmul.f32 %v5360_v42, %v5918_v44  ;;  %v5362_v17 = vpop.eup %5361 }
 0x393   :  { %v1353_v1 = vadd.f32 1.0, %v5362_v17  ;;  %v5364_v2 = vpop.eup %5363 }
 0x394   :  { %v5985_v12 = vadd.f32 %v1562_v35, %v1561_v51  ;;  %v6381_v35 = vld [vmem:[#allocation17_spill] sm:$0xff] }
 0x396   :  { %5365 = vtanh.f32 %v5985_v12 }
 0x397   :  { %5367 = vtanh.f32 %v5981_v4 }
 0x398   :  { %5369 = vrcp.f32 %v1353_v1 }
 0x3a0   :  { %v5366_v36 = vpop.eup %5365 }
 0x3a1   :  { %v1565_v25 = vmul.f32 %v5366_v36, %v5364_v2  ;;  %v5368_v44 = vpop.eup %5367 }
 0x3a2   :  { %v5370_v23 = vpop.eup %5369 }
 0x3a3   :  { %4544 = vmatmul.mubr.msk.f32.vlgmr.msra.gmra.mrb[12].mxu0 %vm244_vm1, %v1565_v25  ;;  %4545 = vmatmul.mubr.msk.f32.vlgmr.msra.gmra.mrb[12].mxu1 %vm244_vm1, %v1565_v25  ;;  %v1360_v13 = vmul.f32 %v5370_v23, %v5368_v44 }
 0x3a4   :  { %4838 = vmatpush1.bf16.msra.mxu0 %v5832_v48  ;;  %4846 = vmatpush1.bf16.msra.mxu1 %v5834_v50 }
 0x3a5   :  { %4840 = vmatprep.subr.bf16.mxu0 %v5836_v55  ;;  %4848 = vmatprep.subr.bf16.mxu1 %v5838_v56 }
 0x3a6   :  { %1778 = vmatprep.mubr.f32.mxu0 %v6371_v9  ;;  %1849 = vmatprep.mubr.f32.mxu1 %v6371_v9 }
 0x3a8   :  { %4842 = vmatpush1.bf16.msra.mxu0 %v5844_v5  ;;  %4850 = vmatpush1.bf16.msra.mxu1 %v5846_v6 }
 0x3a9   :  { %4852 = vmatprep.subr.bf16.mxu0 %v5713_v10  ;;  %4868 = vmatprep.subr.bf16.mxu1 %v5715_v11 }
 0x3ab   :  { %4546 = vmatmul.mubr.msk.f32.vlgmr.msra.gmra.mrb[12].mxu0 %vm644_vm2, %v1360_v13  ;;  %4547 = vmatmul.mubr.msk.f32.vlgmr.msra.gmra.mrb[12].mxu1 %vm644_vm2, %v1360_v13 }
 0x3ac   :  { %4854 = vmatpush1.bf16.msra.mxu0 %v5717_v15  ;;  %4870 = vmatpush1.bf16.msra.mxu1 %v5723_v19 }
 0x3ad   :  { %4856 = vmatprep.subr.bf16.mxu0 %v5725_v20  ;;  %4872 = vmatprep.subr.bf16.mxu1 %v5728_v24 }
 0x3ae   :  { %1950 = vmatprep.mubr.f32.mxu0 %v6371_v9  ;;  %2021 = vmatprep.mubr.f32.mxu1 %v6371_v9 }
 0x3b0   :  { %4858 = vmatpush1.bf16.msra.mxu0 %v5732_v28  ;;  %4874 = vmatpush1.bf16.msra.mxu1 %v5734_v29 }
 0x3b1   :  { %4860 = vmatprep.subr.bf16.mxu0 %v5737_v33  ;;  %4876 = vmatprep.subr.bf16.mxu1 %v5739_v37 }
 0x3b4   :  { %4862 = vmatpush1.bf16.msra.mxu0 %v5742_v41  ;;  %4878 = vmatpush1.bf16.msra.mxu1 %v5746_v45 }
 0x3b5   :  { %4864 = vmatprep.subr.bf16.mxu0 %v5748_v46  ;;  %4880 = vmatprep.subr.bf16.mxu1 %v5751_v49 }
 0x3b8   :  { %4866 = vmatpush1.bf16.msra.mxu0 %v5754_v52  ;;  %4882 = vmatpush1.bf16.msra.mxu1 %v5758_v53 }
 0x3b9   :  { %4884 = vmatprep.subr.bf16.mxu0 %v5767_v57  ;;  %4900 = vmatprep.subr.bf16.mxu1 %v5769_v61 }
 0x3bb   :  { %4551 = vmatmul.mubr.msk.f32.vlgmr.msra.gmra.mrb[14].mxu0 %vm244_vm1, %v1565_v25  ;;  %4552 = vmatmul.mubr.msk.f32.vlgmr.msra.gmra.mrb[14].mxu1 %vm244_vm1, %v1565_v25 }
 0x3bc   :  { %4886 = vmatpush1.bf16.msra.mxu0 %v5771_v62  ;;  %4902 = vmatpush1.bf16.msra.mxu1 %v5774_v3 }
 0x3bd   :  { %4888 = vmatprep.subr.bf16.mxu0 %v5778_v7  ;;  %4904 = vmatprep.subr.bf16.mxu1 %v5780_v8 }
 0x3be   :  { %2156 = vmatprep.mubr.f32.mxu0 %v6371_v9  ;;  %2227 = vmatprep.mubr.f32.mxu1 %v6371_v9 }
 0x3c0   :  { %4890 = vmatpush1.bf16.msra.mxu0 %v5783_v14  ;;  %4906 = vmatpush1.bf16.msra.mxu1 %v5787_v21 }
 0x3c1   :  { %4892 = vmatprep.subr.bf16.mxu0 %v5789_v22  ;;  %4908 = vmatprep.subr.bf16.mxu1 %v5791_v27 }
 0x3c4   :  { %4894 = vmatpush1.bf16.msra.mxu0 %v5794_v34  ;;  %4910 = vmatpush1.bf16.msra.mxu1 %v5798_v39 }
 0x3c5   :  { %4896 = vmatprep.subr.bf16.mxu0 %v5800_v40  ;;  %4912 = vmatprep.subr.bf16.mxu1 %v5803_v47 }
 0x3c8   :  { %4898 = vmatpush1.bf16.msra.mxu0 %v5806_v58  ;;  %4914 = vmatpush1.bf16.msra.mxu1 %v5810_v59 }
 0x3c9   :  { %4916 = vmatprep.subr.bf16.mxu0 %v6377_v31  ;;  %4924 = vmatprep.subr.bf16.mxu1 %v6378_v38 }
 0x47e   :  { %v1780_v60 = vpop.f32.mrb[12].mxu0  ;;  %v1851_v63 = vpop.f32.mrb[12].mxu1 }
 0x47f   :  { %v1856_v54 = vadd.f32 %v1780_v60, %v6379_v16  ;;  %v1782_v0 = vpop.f32.mrb[13].mxu0  ;;  %v1853_v30 = vpop.f32.mrb[13].mxu1  ;;  %v1858_v17 = vadd.f32 %v1851_v63, %v6381_v35 }
 0x480   :  { %v1857_v42 = vadd.f32 %v1782_v0, %v6380_v32 }
 0x481   :  { %v4548_v43 = vmul.f32 -1.442695, %v1856_v54 }
 0x482   :  { %v4549_v51 = vmul.f32 -1.442695, %v1857_v42 }
 0x483   :  { %5371 = vpow2.f32 %v4548_v43  ;;  %v1885_v43 = vld [vmem:[#allocation2 + $0x3] ss:$8 sm:$0xf] }
 0x484   :  { %5373 = vpow2.f32 %v4549_v51 }
 0x485   :  { %5375 = vtanh.f32 %v1858_v17 }
 0x48d   :  { %v5372_v1 = vpop.eup %5371 }
 0x48e   :  { %v5374_v2 = vpop.eup %5373  ;;  %v1863_v36 = vadd.f32 1.0, %v5372_v1  ;;  %v1952_v25 = vpop.f32.mrb[14].mxu0 }
 0x48f   :  { %v2023_v44 = vpop.f32.mrb[14].mxu1  ;;  %v1869_v23 = vadd.f32 1.0, %v5374_v2  ;;  %v1954_v13 = vpop.f32.mrb[15].mxu0 }
 0x490   :  { %v2025_v38 = vpop.f32.mrb[15].mxu1  ;;  %5377 = vrcp.f32 %v1863_v36  ;;  %v2032_v60 = vcombine.low %v1952_v25, %v1954_v13  ;;  %v5376_v1 = vpop.eup %5375 }
 0x491   :  { %v2033_v16 = vcombine.low %v2023_v44, %v2025_v38  ;;  %5379 = vrcp.f32 %v1869_v23 }
 0x492   :  { %v2040_v54 = vrot.slane %v2032_v60, %v5824_v18 }
 0x493   :  { %v2047_v0 = vrot.slane %v2033_v16, %v5824_v18 }
 0x495   :  { %v2048_v42 = vcombine.low %v2040_v54, %v2047_v0  ;;  %v1859_v0 = vadd.f32 %v1853_v30, %v5914_v26 }
 0x497   :  { %v2055_v63 = vrot.slane %v2048_v42, %v5824_v18 }
 0x499   :  { %v2057_v51 = vadd.f32 %v2055_v63, %v1885_v43 }
 0x49a   :  { %v5378_v35 = vpop.eup %5377 }
 0x49b   :  { %v4553_v32 = vmul.f32 -1.442695, %v2057_v51  ;;  %v2065_v17 = vrot.slane %v2057_v51, 1  ;;  %v5380_v2 = vpop.eup %5379  ;;  %v1880_v31 = vmul.f32 %v5378_v35, %v5376_v1  ;;  %v2076_v44 = vrot.slane %v2057_v51, 3 }
 0x49c   :  { %v1879_v36 = vmul.f32 %v5380_v2, %v5981_v4  ;;  %v2073_v13 = vrot.slane %v2057_v51, 2  ;;  %v4550_v35 = vmul.f32 -1.442695, %v1859_v0 }
 0x49d   :  { %5381 = vpow2.f32 %v4553_v32  ;;  %v4554_v38 = vmul.f32 -1.442695, %v2065_v17  ;;  %v4555_v16 = vmul.f32 -1.442695, %v2076_v44 }
 0x49e   :  { %v6048_v25 = vadd.f32 %v1880_v31, %v1879_v36 }
 0x49f   :  { %5383 = vpow2.f32 %v4554_v38 }
 0x4a0   :  { %5385 = vpow2.f32 %v4555_v16 }
 0x4a7   :  { %v5382_v23 = vpop.eup %5381 }
 0x4a8   :  { %v2061_v60 = vadd.f32 1.0, %v5382_v23 }
 0x4a9   :  { %v5384_v54 = vpop.eup %5383 }
 0x4aa   :  { %5387 = vrcp.f32 %v2061_v60  ;;  %v2070_v42 = vadd.f32 1.0, %v5384_v54  ;;  %v5386_v4 = vpop.eup %5385  ;;  %v6383_v60 = vld [vmem:[#allocation14_spill] sm:$0xff] }
 0x4ab   :  { %5389 = vtanh.f32 %v2073_v13  ;;  %v2081_v43 = vadd.f32 1.0, %v5386_v4  ;;  %v6382_v13 = vld [vmem:[#allocation13_spill] sm:$0xff] }
 0x4ac   :  { %5391 = vrcp.f32 %v2070_v42  ;;  %v6384_v42 = vld [vmem:[#allocation15_spill] sm:$0xff] }
 0x4ad   :  { %5393 = vpow2.f32 %v4550_v35 }
 0x4ae   :  { %5395 = vrcp.f32 %v2081_v43 }
 0x4b4   :  { %v5388_v32 = vpop.eup %5387 }
 0x4b5   :  { %v5390_v31 = vpop.eup %5389 }
 0x4b6   :  { %v5392_v63 = vpop.eup %5391  ;;  %v2085_v17 = vmul.f32 %v5390_v31, %v5388_v32  ;;  %v6385_v31 = vld [vmem:[#allocation16_spill] sm:$0xff] }
 0x4b7   :  { %v2084_v1 = vmul.f32 %v5392_v63, %v5985_v12  ;;  %v5394_v30 = vpop.eup %5393 }
 0x4b8   :  { %v1876_v2 = vadd.f32 1.0, %v5394_v30  ;;  %v5396_v36 = vpop.eup %5395 }
 0x4b9   :  { %v6052_v51 = vadd.f32 %v2085_v17, %v2084_v1  ;;  %v6386_v17 = vld [vmem:[#allocation17_spill] sm:$0xff] }
 0x4bb   :  { %5397 = vtanh.f32 %v6052_v51 }
 0x4bc   :  { %5399 = vtanh.f32 %v6048_v25 }
 0x4bd   :  { %5401 = vrcp.f32 %v1876_v2 }
 0x4c5   :  { %v5398_v38 = vpop.eup %5397 }
 0x4c6   :  { %v2088_v44 = vmul.f32 %v5398_v38, %v5396_v36  ;;  %v5400_v12 = vpop.eup %5399 }
 0x4c7   :  { %v5402_v16 = vpop.eup %5401 }
 0x4c8   :  { %4556 = vmatmul.mubr.msk.f32.vlgmr.msra.gmra.mrb[16].mxu0 %vm244_vm1, %v2088_v44  ;;  %4557 = vmatmul.mubr.msk.f32.vlgmr.msra.gmra.mrb[16].mxu1 %vm244_vm1, %v2088_v44  ;;  %v1883_v23 = vmul.f32 %v5402_v16, %v5400_v12 }
 0x4c9   :  { %4918 = vmatpush1.bf16.msra.mxu0 %v5832_v48  ;;  %4926 = vmatpush1.bf16.msra.mxu1 %v5834_v50 }
 0x4ca   :  { %4920 = vmatprep.subr.bf16.mxu0 %v5836_v55  ;;  %4928 = vmatprep.subr.bf16.mxu1 %v5838_v56 }
 0x4cb   :  { %2301 = vmatprep.mubr.f32.mxu0 %v6371_v9  ;;  %2372 = vmatprep.mubr.f32.mxu1 %v6371_v9 }
 0x4cd   :  { %4922 = vmatpush1.bf16.msra.mxu0 %v5844_v5  ;;  %4930 = vmatpush1.bf16.msra.mxu1 %v5846_v6 }
 0x4ce   :  { %4932 = vmatprep.subr.bf16.mxu0 %v5713_v10  ;;  %4948 = vmatprep.subr.bf16.mxu1 %v5715_v11 }
 0x4d0   :  { %4558 = vmatmul.mubr.msk.f32.vlgmr.msra.gmra.mrb[16].mxu0 %vm644_vm2, %v1883_v23  ;;  %4559 = vmatmul.mubr.msk.f32.vlgmr.msra.gmra.mrb[16].mxu1 %vm644_vm2, %v1883_v23 }
 0x4d1   :  { %4934 = vmatpush1.bf16.msra.mxu0 %v5717_v15  ;;  %4950 = vmatpush1.bf16.msra.mxu1 %v5723_v19 }
 0x4d2   :  { %4936 = vmatprep.subr.bf16.mxu0 %v5725_v20  ;;  %4952 = vmatprep.subr.bf16.mxu1 %v5728_v24 }
 0x4d3   :  { %2473 = vmatprep.mubr.f32.mxu0 %v6371_v9  ;;  %2544 = vmatprep.mubr.f32.mxu1 %v6371_v9 }
 0x4d5   :  { %4938 = vmatpush1.bf16.msra.mxu0 %v5732_v28  ;;  %4954 = vmatpush1.bf16.msra.mxu1 %v5734_v29 }
 0x4d6   :  { %4940 = vmatprep.subr.bf16.mxu0 %v5737_v33  ;;  %4956 = vmatprep.subr.bf16.mxu1 %v5739_v37 }
 0x4d9   :  { %4942 = vmatpush1.bf16.msra.mxu0 %v5742_v41  ;;  %4958 = vmatpush1.bf16.msra.mxu1 %v5746_v45 }
 0x4da   :  { %4944 = vmatprep.subr.bf16.mxu0 %v5748_v46  ;;  %4960 = vmatprep.subr.bf16.mxu1 %v5751_v49 }
 0x4dd   :  { %4946 = vmatpush1.bf16.msra.mxu0 %v5754_v52  ;;  %4962 = vmatpush1.bf16.msra.mxu1 %v5758_v53 }
 0x4de   :  { %4964 = vmatprep.subr.bf16.mxu0 %v5767_v57  ;;  %4980 = vmatprep.subr.bf16.mxu1 %v5769_v61 }
 0x4e0   :  { %4563 = vmatmul.mubr.msk.f32.vlgmr.msra.gmra.mrb[18].mxu0 %vm244_vm1, %v2088_v44  ;;  %4564 = vmatmul.mubr.msk.f32.vlgmr.msra.gmra.mrb[18].mxu1 %vm244_vm1, %v2088_v44 }
 0x4e1   :  { %4966 = vmatpush1.bf16.msra.mxu0 %v5771_v62  ;;  %4982 = vmatpush1.bf16.msra.mxu1 %v5774_v3 }
 0x4e2   :  { %4968 = vmatprep.subr.bf16.mxu0 %v5778_v7  ;;  %4984 = vmatprep.subr.bf16.mxu1 %v5780_v8 }
 0x4e3   :  { %2679 = vmatprep.mubr.f32.mxu0 %v6371_v9  ;;  %2750 = vmatprep.mubr.f32.mxu1 %v6371_v9 }
 0x4e5   :  { %4970 = vmatpush1.bf16.msra.mxu0 %v5783_v14  ;;  %4986 = vmatpush1.bf16.msra.mxu1 %v5787_v21 }
 0x4e6   :  { %4972 = vmatprep.subr.bf16.mxu0 %v5789_v22  ;;  %4988 = vmatprep.subr.bf16.mxu1 %v5791_v27 }
 0x4e9   :  { %4974 = vmatpush1.bf16.msra.mxu0 %v5794_v34  ;;  %4990 = vmatpush1.bf16.msra.mxu1 %v5798_v39 }
 0x4ea   :  { %4976 = vmatprep.subr.bf16.mxu0 %v5800_v40  ;;  %4992 = vmatprep.subr.bf16.mxu1 %v5803_v47 }
 0x4ed   :  { %4978 = vmatpush1.bf16.msra.mxu0 %v5806_v58  ;;  %4994 = vmatpush1.bf16.msra.mxu1 %v5810_v59 }
 0x4ee   :  { %4996 = vmatprep.subr.bf16.mxu0 %v6382_v13  ;;  %5004 = vmatprep.subr.bf16.mxu1 %v6383_v60 }
 0x5a3   :  { %v2303_v54 = vpop.f32.mrb[16].mxu0  ;;  %v2374_v0 = vpop.f32.mrb[16].mxu1 }
 0x5a4   :  { %v2379_v35 = vadd.f32 %v2303_v54, %v6384_v42  ;;  %v2305_v4 = vpop.f32.mrb[17].mxu0  ;;  %v2376_v32 = vpop.f32.mrb[17].mxu1  ;;  %v2381_v30 = vadd.f32 %v2374_v0, %v6386_v17 }
 0x5a5   :  { %v2380_v63 = vadd.f32 %v2305_v4, %v6385_v31 }
 0x5a6   :  { %v4560_v43 = vmul.f32 -1.442695, %v2379_v35 }
 0x5a7   :  { %v4561_v1 = vmul.f32 -1.442695, %v2380_v63 }
 0x5a8   :  { %5403 = vpow2.f32 %v4560_v43  ;;  %v2408_v43 = vld [vmem:[#allocation2 + $0x4] ss:$8 sm:$0xf] }
 0x5a9   :  { %5405 = vpow2.f32 %v4561_v1 }
 0x5aa   :  { %5407 = vtanh.f32 %v2381_v30 }
 0x5b2   :  { %v5404_v2 = vpop.eup %5403 }
 0x5b3   :  { %v5406_v36 = vpop.eup %5405  ;;  %v2386_v38 = vadd.f32 1.0, %v5404_v2  ;;  %v2475_v44 = vpop.f32.mrb[18].mxu0 }
 0x5b4   :  { %v2546_v12 = vpop.f32.mrb[18].mxu1  ;;  %v2392_v16 = vadd.f32 1.0, %v5406_v36  ;;  %v2477_v23 = vpop.f32.mrb[19].mxu0 }
 0x5b5   :  { %v2548_v60 = vpop.f32.mrb[19].mxu1  ;;  %5409 = vrcp.f32 %v2386_v38  ;;  %v2555_v54 = vcombine.low %v2475_v44, %v2477_v23  ;;  %v5408_v2 = vpop.eup %5407 }
 0x5b6   :  { %v2556_v42 = vcombine.low %v2546_v12, %v2548_v60  ;;  %5411 = vrcp.f32 %v2392_v16 }
 0x5b7   :  { %v2563_v35 = vrot.slane %v2555_v54, %v5824_v18 }
 0x5b8   :  { %v2570_v4 = vrot.slane %v2556_v42, %v5824_v18 }
 0x5ba   :  { %v2571_v63 = vcombine.low %v2563_v35, %v2570_v4  ;;  %v2382_v4 = vadd.f32 %v2376_v32, %v5914_v26 }
 0x5bc   :  { %v2578_v0 = vrot.slane %v2571_v63, %v5824_v18 }
 0x5be   :  { %v2580_v1 = vadd.f32 %v2578_v0, %v2408_v43 }
 0x5bf   :  { %v5410_v17 = vpop.eup %5409 }
 0x5c0   :  { %v4565_v31 = vmul.f32 -1.442695, %v2580_v1  ;;  %v2588_v30 = vrot.slane %v2580_v1, 1  ;;  %v5412_v36 = vpop.eup %5411  ;;  %v2403_v13 = vmul.f32 %v5410_v17, %v5408_v2  ;;  %v2599_v12 = vrot.slane %v2580_v1, 3 }
 0x5c1   :  { %v2402_v38 = vmul.f32 %v5412_v36, %v6048_v25  ;;  %v2596_v23 = vrot.slane %v2580_v1, 2  ;;  %v4562_v17 = vmul.f32 -1.442695, %v2382_v4 }
 0x5c2   :  { %5413 = vpow2.f32 %v4565_v31  ;;  %v4566_v60 = vmul.f32 -1.442695, %v2588_v30  ;;  %v4567_v42 = vmul.f32 -1.442695, %v2599_v12 }
 0x5c3   :  { %v6115_v44 = vadd.f32 %v2403_v13, %v2402_v38 }
 0x5c4   :  { %5415 = vpow2.f32 %v4566_v60 }
 0x5c5   :  { %5417 = vpow2.f32 %v4567_v42 }
 0x5cc   :  { %v5414_v16 = vpop.eup %5413 }
 0x5cd   :  { %v2584_v54 = vadd.f32 1.0, %v5414_v16 }
 0x5ce   :  { %v5416_v35 = vpop.eup %5415 }
 0x5cf   :  { %5419 = vrcp.f32 %v2584_v54  ;;  %v2593_v63 = vadd.f32 1.0, %v5416_v35  ;;  %v5418_v25 = vpop.eup %5417  ;;  %v6388_v54 = vld [vmem:[#allocation14_spill] sm:$0xff] }
 0x5d0   :  { %5421 = vtanh.f32 %v2596_v23  ;;  %v2604_v43 = vadd.f32 1.0, %v5418_v25  ;;  %v6387_v23 = vld [vmem:[#allocation13_spill] sm:$0xff] }
 0x5d1   :  { %5423 = vrcp.f32 %v2593_v63  ;;  %v6389_v63 = vld [vmem:[#allocation15_spill] sm:$0xff] }
 0x5d2   :  { %5425 = vpow2.f32 %v4562_v17 }
 0x5d3   :  { %5427 = vrcp.f32 %v2604_v43 }
 0x5d9   :  { %v5420_v31 = vpop.eup %5419 }
 0x5da   :  { %v5422_v13 = vpop.eup %5421 }
 0x5db   :  { %v5424_v0 = vpop.eup %5423  ;;  %v2608_v30 = vmul.f32 %v5422_v13, %v5420_v31  ;;  %v6390_v13 = vld [vmem:[#allocation16_spill] sm:$0xff] }
 0x5dc   :  { %v2607_v2 = vmul.f32 %v5424_v0, %v6052_v51  ;;  %v5426_v32 = vpop.eup %5425 }
 0x5dd   :  { %v2399_v36 = vadd.f32 1.0, %v5426_v32  ;;  %v5428_v38 = vpop.eup %5427 }
 0x5de   :  { %v6119_v1 = vadd.f32 %v2608_v30, %v2607_v2  ;;  %v6391_v30 = vld [vmem:[#allocation17_spill] sm:$0xff] }
 0x5e0   :  { %5429 = vtanh.f32 %v6119_v1 }
 0x5e1   :  { %5431 = vtanh.f32 %v6115_v44 }
 0x5e2   :  { %5433 = vrcp.f32 %v2399_v36 }
 0x5ea   :  { %v5430_v60 = vpop.eup %5429 }
 0x5eb   :  { %v2611_v12 = vmul.f32 %v5430_v60, %v5428_v38  ;;  %v5432_v51 = vpop.eup %5431 }
 0x5ec   :  { %v5434_v42 = vpop.eup %5433 }
 0x5ed   :  { %4568 = vmatmul.mubr.msk.f32.vlgmr.msra.gmra.mrb[20].mxu0 %vm244_vm1, %v2611_v12  ;;  %4569 = vmatmul.mubr.msk.f32.vlgmr.msra.gmra.mrb[20].mxu1 %vm244_vm1, %v2611_v12  ;;  %v2406_v16 = vmul.f32 %v5434_v42, %v5432_v51 }
 0x5ee   :  { %4998 = vmatpush1.bf16.msra.mxu0 %v5832_v48  ;;  %5006 = vmatpush1.bf16.msra.mxu1 %v5834_v50 }
 0x5ef   :  { %5000 = vmatprep.subr.bf16.mxu0 %v5836_v55  ;;  %5008 = vmatprep.subr.bf16.mxu1 %v5838_v56 }
 0x5f0   :  { %2824 = vmatprep.mubr.f32.mxu0 %v6371_v9  ;;  %2895 = vmatprep.mubr.f32.mxu1 %v6371_v9 }
 0x5f2   :  { %5002 = vmatpush1.bf16.msra.mxu0 %v5844_v5  ;;  %5010 = vmatpush1.bf16.msra.mxu1 %v5846_v6 }
 0x5f3   :  { %5012 = vmatprep.subr.bf16.mxu0 %v5713_v10  ;;  %5028 = vmatprep.subr.bf16.mxu1 %v5715_v11 }
 0x5f5   :  { %4570 = vmatmul.mubr.msk.f32.vlgmr.msra.gmra.mrb[20].mxu0 %vm644_vm2, %v2406_v16  ;;  %4571 = vmatmul.mubr.msk.f32.vlgmr.msra.gmra.mrb[20].mxu1 %vm644_vm2, %v2406_v16 }
 0x5f6   :  { %5014 = vmatpush1.bf16.msra.mxu0 %v5717_v15  ;;  %5030 = vmatpush1.bf16.msra.mxu1 %v5723_v19 }
 0x5f7   :  { %5016 = vmatprep.subr.bf16.mxu0 %v5725_v20  ;;  %5032 = vmatprep.subr.bf16.mxu1 %v5728_v24 }
 0x5f8   :  { %2996 = vmatprep.mubr.f32.mxu0 %v6371_v9  ;;  %3067 = vmatprep.mubr.f32.mxu1 %v6371_v9 }
 0x5fa   :  { %5018 = vmatpush1.bf16.msra.mxu0 %v5732_v28  ;;  %5034 = vmatpush1.bf16.msra.mxu1 %v5734_v29 }
 0x5fb   :  { %5020 = vmatprep.subr.bf16.mxu0 %v5737_v33  ;;  %5036 = vmatprep.subr.bf16.mxu1 %v5739_v37 }
 0x5fe   :  { %5022 = vmatpush1.bf16.msra.mxu0 %v5742_v41  ;;  %5038 = vmatpush1.bf16.msra.mxu1 %v5746_v45 }
 0x5ff   :  { %5024 = vmatprep.subr.bf16.mxu0 %v5748_v46  ;;  %5040 = vmatprep.subr.bf16.mxu1 %v5751_v49 }
 0x602   :  { %5026 = vmatpush1.bf16.msra.mxu0 %v5754_v52  ;;  %5042 = vmatpush1.bf16.msra.mxu1 %v5758_v53 }
 0x603   :  { %5044 = vmatprep.subr.bf16.mxu0 %v5767_v57  ;;  %5060 = vmatprep.subr.bf16.mxu1 %v5769_v61 }
 0x605   :  { %4575 = vmatmul.mubr.msk.f32.vlgmr.msra.gmra.mrb[22].mxu0 %vm244_vm1, %v2611_v12  ;;  %4576 = vmatmul.mubr.msk.f32.vlgmr.msra.gmra.mrb[22].mxu1 %vm244_vm1, %v2611_v12 }
 0x606   :  { %5046 = vmatpush1.bf16.msra.mxu0 %v5771_v62  ;;  %5062 = vmatpush1.bf16.msra.mxu1 %v5774_v3 }
 0x607   :  { %5048 = vmatprep.subr.bf16.mxu0 %v5778_v7  ;;  %5064 = vmatprep.subr.bf16.mxu1 %v5780_v8 }
 0x608   :  { %3202 = vmatprep.mubr.f32.mxu0 %v6371_v9  ;;  %3273 = vmatprep.mubr.f32.mxu1 %v6371_v9 }
 0x60a   :  { %5050 = vmatpush1.bf16.msra.mxu0 %v5783_v14  ;;  %5066 = vmatpush1.bf16.msra.mxu1 %v5787_v21 }
 0x60b   :  { %5052 = vmatprep.subr.bf16.mxu0 %v5789_v22  ;;  %5068 = vmatprep.subr.bf16.mxu1 %v5791_v27 }
 0x60e   :  { %5054 = vmatpush1.bf16.msra.mxu0 %v5794_v34  ;;  %5070 = vmatpush1.bf16.msra.mxu1 %v5798_v39 }
 0x60f   :  { %5056 = vmatprep.subr.bf16.mxu0 %v5800_v40  ;;  %5072 = vmatprep.subr.bf16.mxu1 %v5803_v47 }
 0x612   :  { %5058 = vmatpush1.bf16.msra.mxu0 %v5806_v58  ;;  %5074 = vmatpush1.bf16.msra.mxu1 %v5810_v59 }
 0x613   :  { %5076 = vmatprep.subr.bf16.mxu0 %v6387_v23  ;;  %5084 = vmatprep.subr.bf16.mxu1 %v6388_v54 }
 0x6c8   :  { %v2826_v35 = vpop.f32.mrb[20].mxu0  ;;  %v2897_v4 = vpop.f32.mrb[20].mxu1 }
 0x6c9   :  { %v2902_v17 = vadd.f32 %v2826_v35, %v6389_v63  ;;  %v2828_v25 = vpop.f32.mrb[21].mxu0  ;;  %v2899_v31 = vpop.f32.mrb[21].mxu1  ;;  %v2904_v32 = vadd.f32 %v2897_v4, %v6391_v30 }
 0x6ca   :  { %v2903_v0 = vadd.f32 %v2828_v25, %v6390_v13 }
 0x6cb   :  { %v4572_v43 = vmul.f32 -1.442695, %v2902_v17 }
 0x6cc   :  { %v4573_v2 = vmul.f32 -1.442695, %v2903_v0 }
 0x6cd   :  { %5435 = vpow2.f32 %v4572_v43  ;;  %v2931_v43 = vld [vmem:[#allocation2 + $0x5] ss:$8 sm:$0xf] }
 0x6ce   :  { %5437 = vpow2.f32 %v4573_v2 }
 0x6cf   :  { %5439 = vtanh.f32 %v2904_v32 }
 0x6d7   :  { %v5436_v36 = vpop.eup %5435 }
 0x6d8   :  { %v5438_v38 = vpop.eup %5437  ;;  %v2909_v60 = vadd.f32 1.0, %v5436_v36  ;;  %v2998_v12 = vpop.f32.mrb[22].mxu0 }
 0x6d9   :  { %v3069_v51 = vpop.f32.mrb[22].mxu1  ;;  %v2915_v42 = vadd.f32 1.0, %v5438_v38  ;;  %v3000_v16 = vpop.f32.mrb[23].mxu0 }
 0x6da   :  { %v3071_v54 = vpop.f32.mrb[23].mxu1  ;;  %5441 = vrcp.f32 %v2909_v60  ;;  %v3078_v35 = vcombine.low %v2998_v12, %v3000_v16  ;;  %v5440_v36 = vpop.eup %5439 }
 0x6db   :  { %v3079_v63 = vcombine.low %v3069_v51, %v3071_v54  ;;  %5443 = vrcp.f32 %v2915_v42 }
 0x6dc   :  { %v3086_v17 = vrot.slane %v3078_v35, %v5824_v18 }
 0x6dd   :  { %v3093_v25 = vrot.slane %v3079_v63, %v5824_v18 }
 0x6df   :  { %v3094_v0 = vcombine.low %v3086_v17, %v3093_v25  ;;  %v2905_v25 = vadd.f32 %v2899_v31, %v5914_v26 }
 0x6e1   :  { %v3101_v4 = vrot.slane %v3094_v0, %v5824_v18 }
 0x6e3   :  { %v3103_v2 = vadd.f32 %v3101_v4, %v2931_v43 }
 0x6e4   :  { %v5442_v30 = vpop.eup %5441 }
 0x6e5   :  { %v4577_v13 = vmul.f32 -1.442695, %v3103_v2  ;;  %v3111_v32 = vrot.slane %v3103_v2, 1  ;;  %v5444_v38 = vpop.eup %5443  ;;  %v2926_v23 = vmul.f32 %v5442_v30, %v5440_v36  ;;  %v3122_v51 = vrot.slane %v3103_v2, 3 }
 0x6e6   :  { %v2925_v60 = vmul.f32 %v5444_v38, %v6115_v44  ;;  %v3119_v16 = vrot.slane %v3103_v2, 2  ;;  %v4574_v30 = vmul.f32 -1.442695, %v2905_v25 }
 0x6e7   :  { %5445 = vpow2.f32 %v4577_v13  ;;  %v4578_v54 = vmul.f32 -1.442695, %v3111_v32  ;;  %v4579_v63 = vmul.f32 -1.442695, %v3122_v51 }
 0x6e8   :  { %v6182_v12 = vadd.f32 %v2926_v23, %v2925_v60 }
 0x6e9   :  { %5447 = vpow2.f32 %v4578_v54 }
 0x6ea   :  { %5449 = vpow2.f32 %v4579_v63 }
 0x6f1   :  { %v5446_v42 = vpop.eup %5445 }
 0x6f2   :  { %v3107_v35 = vadd.f32 1.0, %v5446_v42 }
 0x6f3   :  { %v5448_v17 = vpop.eup %5447 }
 0x6f4   :  { %5451 = vrcp.f32 %v3107_v35  ;;  %v3116_v0 = vadd.f32 1.0, %v5448_v17  ;;  %v5450_v44 = vpop.eup %5449  ;;  %v6393_v35 = vld [vmem:[#allocation14_spill] sm:$0xff] }
 0x6f5   :  { %5453 = vtanh.f32 %v3119_v16  ;;  %v3127_v43 = vadd.f32 1.0, %v5450_v44  ;;  %v6392_v16 = vld [vmem:[#allocation13_spill] sm:$0xff] }
 0x6f6   :  { %5455 = vrcp.f32 %v3116_v0  ;;  %v6394_v0 = vld [vmem:[#allocation15_spill] sm:$0xff] }
 0x6f7   :  { %5457 = vpow2.f32 %v4574_v30 }
 0x6f8   :  { %5459 = vrcp.f32 %v3127_v43 }
 0x6fe   :  { %v5452_v13 = vpop.eup %5451 }
 0x6ff   :  { %v5454_v23 = vpop.eup %5453 }
 0x700   :  { %v5456_v4 = vpop.eup %5455  ;;  %v3131_v32 = vmul.f32 %v5454_v23, %v5452_v13  ;;  %v6395_v23 = vld [vmem:[#allocation16_spill] sm:$0xff] }
 0x701   :  { %v3130_v36 = vmul.f32 %v5456_v4, %v6119_v1  ;;  %v5458_v31 = vpop.eup %5457 }
 0x702   :  { %v2922_v38 = vadd.f32 1.0, %v5458_v31  ;;  %v5460_v60 = vpop.eup %5459 }
 0x703   :  { %v6186_v2 = vadd.f32 %v3131_v32, %v3130_v36  ;;  %v6396_v32 = vld [vmem:[#allocation17_spill] sm:$0xff] }
 0x705   :  { %5461 = vtanh.f32 %v6186_v2 }
 0x706   :  { %5463 = vtanh.f32 %v6182_v12 }
 0x707   :  { %5465 = vrcp.f32 %v2922_v38 }
 0x70f   :  { %v5462_v54 = vpop.eup %5461 }
 0x710   :  { %v3134_v51 = vmul.f32 %v5462_v54, %v5460_v60  ;;  %v5464_v1 = vpop.eup %5463 }
 0x711   :  { %v5466_v63 = vpop.eup %5465 }
 0x712   :  { %4580 = vmatmul.mubr.msk.f32.vlgmr.msra.gmra.mrb[24].mxu0 %vm244_vm1, %v3134_v51  ;;  %4581 = vmatmul.mubr.msk.f32.vlgmr.msra.gmra.mrb[24].mxu1 %vm244_vm1, %v3134_v51  ;;  %v2929_v42 = vmul.f32 %v5466_v63, %v5464_v1 }
 0x713   :  { %5078 = vmatpush1.bf16.msra.mxu0 %v5832_v48  ;;  %5086 = vmatpush1.bf16.msra.mxu1 %v5834_v50 }
 0x714   :  { %5080 = vmatprep.subr.bf16.mxu0 %v5836_v55  ;;  %5088 = vmatprep.subr.bf16.mxu1 %v5838_v56 }
 0x715   :  { %3347 = vmatprep.mubr.f32.mxu0 %v6371_v9  ;;  %3418 = vmatprep.mubr.f32.mxu1 %v6371_v9 }
 0x717   :  { %5082 = vmatpush1.bf16.msra.mxu0 %v5844_v5  ;;  %5090 = vmatpush1.bf16.msra.mxu1 %v5846_v6 }
 0x718   :  { %5092 = vmatprep.subr.bf16.mxu0 %v5713_v10  ;;  %5108 = vmatprep.subr.bf16.mxu1 %v5715_v11 }
 0x71a   :  { %4582 = vmatmul.mubr.msk.f32.vlgmr.msra.gmra.mrb[24].mxu0 %vm644_vm2, %v2929_v42  ;;  %4583 = vmatmul.mubr.msk.f32.vlgmr.msra.gmra.mrb[24].mxu1 %vm644_vm2, %v2929_v42 }
 0x71b   :  { %5094 = vmatpush1.bf16.msra.mxu0 %v5717_v15  ;;  %5110 = vmatpush1.bf16.msra.mxu1 %v5723_v19 }
 0x71c   :  { %5096 = vmatprep.subr.bf16.mxu0 %v5725_v20  ;;  %5112 = vmatprep.subr.bf16.mxu1 %v5728_v24 }
 0x71d   :  { %3519 = vmatprep.mubr.f32.mxu0 %v6371_v9  ;;  %3590 = vmatprep.mubr.f32.mxu1 %v6371_v9 }
 0x71f   :  { %5098 = vmatpush1.bf16.msra.mxu0 %v5732_v28  ;;  %5114 = vmatpush1.bf16.msra.mxu1 %v5734_v29 }
 0x720   :  { %5100 = vmatprep.subr.bf16.mxu0 %v5737_v33  ;;  %5116 = vmatprep.subr.bf16.mxu1 %v5739_v37 }
 0x723   :  { %5102 = vmatpush1.bf16.msra.mxu0 %v5742_v41  ;;  %5118 = vmatpush1.bf16.msra.mxu1 %v5746_v45 }
 0x724   :  { %5104 = vmatprep.subr.bf16.mxu0 %v5748_v46  ;;  %5120 = vmatprep.subr.bf16.mxu1 %v5751_v49 }
 0x727   :  { %5106 = vmatpush1.bf16.msra.mxu0 %v5754_v52  ;;  %5122 = vmatpush1.bf16.msra.mxu1 %v5758_v53 }
 0x728   :  { %5124 = vmatprep.subr.bf16.mxu0 %v5767_v57  ;;  %5140 = vmatprep.subr.bf16.mxu1 %v5769_v61 }
 0x72a   :  { %4587 = vmatmul.mubr.msk.f32.vlgmr.msra.gmra.mrb[26].mxu0 %vm244_vm1, %v3134_v51  ;;  %4588 = vmatmul.mubr.msk.f32.vlgmr.msra.gmra.mrb[26].mxu1 %vm244_vm1, %v3134_v51 }
 0x72b   :  { %5126 = vmatpush1.bf16.msra.mxu0 %v5771_v62  ;;  %5142 = vmatpush1.bf16.msra.mxu1 %v5774_v3 }
 0x72c   :  { %5128 = vmatprep.subr.bf16.mxu0 %v5778_v7  ;;  %5144 = vmatprep.subr.bf16.mxu1 %v5780_v8 }
 0x72d   :  { %3725 = vmatprep.mubr.f32.mxu0 %v6371_v9  ;;  %3796 = vmatprep.mubr.f32.mxu1 %v6371_v9 }
 0x72f   :  { %5130 = vmatpush1.bf16.msra.mxu0 %v5783_v14  ;;  %5146 = vmatpush1.bf16.msra.mxu1 %v5787_v21 }
 0x730   :  { %5132 = vmatprep.subr.bf16.mxu0 %v5789_v22  ;;  %5148 = vmatprep.subr.bf16.mxu1 %v5791_v27 }
 0x733   :  { %5134 = vmatpush1.bf16.msra.mxu0 %v5794_v34  ;;  %5150 = vmatpush1.bf16.msra.mxu1 %v5798_v39 }
 0x734   :  { %5136 = vmatprep.subr.bf16.mxu0 %v5800_v40  ;;  %5152 = vmatprep.subr.bf16.mxu1 %v5803_v47 }
 0x737   :  { %5138 = vmatpush1.bf16.msra.mxu0 %v5806_v58  ;;  %5154 = vmatpush1.bf16.msra.mxu1 %v5810_v59 }
 0x738   :  { %5156 = vmatprep.subr.bf16.mxu0 %v6392_v16  ;;  %5164 = vmatprep.subr.bf16.mxu1 %v6393_v35 }
 0x7ed   :  { %v3349_v17 = vpop.f32.mrb[24].mxu0  ;;  %v3420_v25 = vpop.f32.mrb[24].mxu1 }
 0x7ee   :  { %v3425_v30 = vadd.f32 %v3349_v17, %v6394_v0  ;;  %v3351_v44 = vpop.f32.mrb[25].mxu0  ;;  %v3422_v13 = vpop.f32.mrb[25].mxu1  ;;  %v3427_v31 = vadd.f32 %v3420_v25, %v6396_v32 }
 0x7ef   :  { %v3426_v4 = vadd.f32 %v3351_v44, %v6395_v23 }
 0x7f0   :  { %v4584_v43 = vmul.f32 -1.442695, %v3425_v30 }
 0x7f1   :  { %v4585_v36 = vmul.f32 -1.442695, %v3426_v4 }
 0x7f2   :  { %5467 = vpow2.f32 %v4584_v43  ;;  %v3454_v43 = vld [vmem:[#allocation2 + $0x6] ss:$8 sm:$0xf] }
 0x7f3   :  { %5469 = vpow2.f32 %v4585_v36 }
 0x7f4   :  { %5471 = vtanh.f32 %v3427_v31 }
 0x7fc   :  { %v5468_v38 = vpop.eup %5467 }
 0x7fd   :  { %v5470_v60 = vpop.eup %5469  ;;  %v3432_v54 = vadd.f32 1.0, %v5468_v38  ;;  %v3521_v51 = vpop.f32.mrb[26].mxu0 }
 0x7fe   :  { %v3592_v1 = vpop.f32.mrb[26].mxu1  ;;  %v3438_v63 = vadd.f32 1.0, %v5470_v60  ;;  %v3523_v42 = vpop.f32.mrb[27].mxu0 }
 0x7ff   :  { %v3594_v35 = vpop.f32.mrb[27].mxu1  ;;  %5473 = vrcp.f32 %v3432_v54  ;;  %v3601_v17 = vcombine.low %v3521_v51, %v3523_v42  ;;  %v5472_v38 = vpop.eup %5471 }
 0x800   :  { %v3602_v0 = vcombine.low %v3592_v1, %v3594_v35  ;;  %5475 = vrcp.f32 %v3438_v63 }
 0x801   :  { %v3609_v30 = vrot.slane %v3601_v17, %v5824_v18 }
 0x802   :  { %v3616_v44 = vrot.slane %v3602_v0, %v5824_v18 }
 0x804   :  { %v3617_v4 = vcombine.low %v3609_v30, %v3616_v44  ;;  %v3428_v44 = vadd.f32 %v3422_v13, %v5914_v26 }
 0x806   :  { %v3624_v25 = vrot.slane %v3617_v4, %v5824_v18 }
 0x808   :  { %v3626_v36 = vadd.f32 %v3624_v25, %v3454_v43 }
 0x809   :  { %v5474_v32 = vpop.eup %5473 }
 0x80a   :  { %v4589_v23 = vmul.f32 -1.442695, %v3626_v36  ;;  %v3634_v31 = vrot.slane %v3626_v36, 1  ;;  %v5476_v60 = vpop.eup %5475  ;;  %v3449_v16 = vmul.f32 %v5474_v32, %v5472_v38  ;;  %v3645_v1 = vrot.slane %v3626_v36, 3 }
 0x80b   :  { %v3448_v54 = vmul.f32 %v5476_v60, %v6182_v12  ;;  %v3642_v42 = vrot.slane %v3626_v36, 2  ;;  %v4586_v32 = vmul.f32 -1.442695, %v3428_v44 }
 0x80c   :  { %5477 = vpow2.f32 %v4589_v23  ;;  %v4590_v35 = vmul.f32 -1.442695, %v3634_v31  ;;  %v4591_v0 = vmul.f32 -1.442695, %v3645_v1 }
 0x80d   :  { %v6249_v51 = vadd.f32 %v3449_v16, %v3448_v54 }
 0x80e   :  { %5479 = vpow2.f32 %v4590_v35 }
 0x80f   :  { %5481 = vpow2.f32 %v4591_v0 }
 0x816   :  { %v5478_v63 = vpop.eup %5477 }
 0x817   :  { %v3630_v17 = vadd.f32 1.0, %v5478_v63 }
 0x818   :  { %v5480_v30 = vpop.eup %5479 }
 0x819   :  { %5483 = vrcp.f32 %v3630_v17  ;;  %v3639_v4 = vadd.f32 1.0, %v5480_v30  ;;  %v5482_v12 = vpop.eup %5481 }
 0x81a   :  { %5485 = vtanh.f32 %v3642_v42  ;;  %v3650_v43 = vadd.f32 1.0, %v5482_v12 }
 0x81b   :  { %5487 = vrcp.f32 %v3639_v4 }
 0x81c   :  { %5489 = vpow2.f32 %v4586_v32 }
 0x81d   :  { %5491 = vrcp.f32 %v3650_v43 }
 0x823   :  { %v5484_v23 = vpop.eup %5483 }
 0x824   :  { %v5486_v16 = vpop.eup %5485 }
 0x825   :  { %v5488_v25 = vpop.eup %5487  ;;  %v3654_v31 = vmul.f32 %v5486_v16, %v5484_v23 }
 0x826   :  { %v3653_v38 = vmul.f32 %v5488_v25, %v6186_v2  ;;  %v5490_v13 = vpop.eup %5489 }
 0x827   :  { %v3445_v60 = vadd.f32 1.0, %v5490_v13  ;;  %v5492_v54 = vpop.eup %5491 }
 0x828   :  { %v6253_v36 = vadd.f32 %v3654_v31, %v3653_v38 }
 0x82a   :  { %5493 = vtanh.f32 %v6253_v36 }
 0x82b   :  { %5495 = vtanh.f32 %v6249_v51 }
 0x82c   :  { %5497 = vrcp.f32 %v3445_v60 }
 0x834   :  { %v5494_v35 = vpop.eup %5493 }
 0x835   :  { %v3657_v1 = vmul.f32 %v5494_v35, %v5492_v54  ;;  %v5496_v2 = vpop.eup %5495 }
 0x836   :  { %v5498_v0 = vpop.eup %5497 }
 0x837   :  { %4592 = vmatmul.mubr.msk.f32.vlgmr.msra.gmra.mrb[28].mxu0 %vm244_vm1, %v3657_v1  ;;  %4593 = vmatmul.mubr.msk.f32.vlgmr.msra.gmra.mrb[28].mxu1 %vm244_vm1, %v3657_v1  ;;  %v3452_v63 = vmul.f32 %v5498_v0, %v5496_v2 }
 0x838   :  { %5158 = vmatpush1.bf16.msra.mxu0 %v5832_v48  ;;  %5166 = vmatpush1.bf16.msra.mxu1 %v5834_v50 }
 0x839   :  { %5160 = vmatprep.subr.bf16.mxu0 %v5836_v55  ;;  %5168 = vmatprep.subr.bf16.mxu1 %v5838_v56 }
 0x83a   :  { %3870 = vmatprep.mubr.f32.mxu0 %v6371_v9  ;;  %3941 = vmatprep.mubr.f32.mxu1 %v6371_v9 }
 0x83c   :  { %5162 = vmatpush1.bf16.msra.mxu0 %v5844_v5  ;;  %5170 = vmatpush1.bf16.msra.mxu1 %v5846_v6 }
 0x83d   :  { %5172 = vmatprep.subr.bf16.mxu0 %v5713_v10  ;;  %5188 = vmatprep.subr.bf16.mxu1 %v5715_v11  ;;  %v6397_v10 = vld [vmem:[#allocation13_spill] sm:$0xff]  ;;  %v6398_v11 = vld [vmem:[#allocation14_spill] sm:$0xff] }
 0x83f   :  { %4594 = vmatmul.mubr.msk.f32.vlgmr.msra.gmra.mrb[28].mxu0 %vm644_vm2, %v3452_v63  ;;  %4595 = vmatmul.mubr.msk.f32.vlgmr.msra.gmra.mrb[28].mxu1 %vm644_vm2, %v3452_v63 }
 0x840   :  { %5174 = vmatpush1.bf16.msra.mxu0 %v5717_v15  ;;  %5190 = vmatpush1.bf16.msra.mxu1 %v5723_v19 }
 0x841   :  { %5176 = vmatprep.subr.bf16.mxu0 %v5725_v20  ;;  %5192 = vmatprep.subr.bf16.mxu1 %v5728_v24  ;;  %v6399_v20 = vld [vmem:[#allocation15_spill] sm:$0xff] }
 0x842   :  { %4042 = vmatprep.mubr.f32.mxu0 %v6371_v9  ;;  %4113 = vmatprep.mubr.f32.mxu1 %v6371_v9 }
 0x844   :  { %5178 = vmatpush1.bf16.msra.mxu0 %v5732_v28  ;;  %5194 = vmatpush1.bf16.msra.mxu1 %v5734_v29 }
 0x845   :  { %5180 = vmatprep.subr.bf16.mxu0 %v5737_v33  ;;  %5196 = vmatprep.subr.bf16.mxu1 %v5739_v37  ;;  %v6400_v33 = vld [vmem:[#allocation16_spill] sm:$0xff] }
 0x848   :  { %5182 = vmatpush1.bf16.msra.mxu0 %v5742_v41  ;;  %5198 = vmatpush1.bf16.msra.mxu1 %v5746_v45 }
 0x849   :  { %5184 = vmatprep.subr.bf16.mxu0 %v5748_v46  ;;  %5200 = vmatprep.subr.bf16.mxu1 %v5751_v49  ;;  %v6401_v46 = vld [vmem:[#allocation17_spill] sm:$0xff] }
 0x84c   :  { %5186 = vmatpush1.bf16.msra.mxu0 %v5754_v52  ;;  %5202 = vmatpush1.bf16.msra.mxu1 %v5758_v53 }
 0x84d   :  { %5204 = vmatprep.subr.bf16.mxu0 %v5767_v57  ;;  %5220 = vmatprep.subr.bf16.mxu1 %v5769_v61 }
 0x84f   :  { %4599 = vmatmul.mubr.msk.f32.vlgmr.msra.gmra.mrb[30].mxu0 %vm244_vm1, %v3657_v1  ;;  %4600 = vmatmul.mubr.msk.f32.vlgmr.msra.gmra.mrb[30].mxu1 %vm244_vm1, %v3657_v1 }
 0x850   :  { %5206 = vmatpush1.bf16.msra.mxu0 %v5771_v62  ;;  %5222 = vmatpush1.bf16.msra.mxu1 %v5774_v3 }
 0x851   :  { %5208 = vmatprep.subr.bf16.mxu0 %v5778_v7  ;;  %5224 = vmatprep.subr.bf16.mxu1 %v5780_v8 }
 0x852   :  { %4248 = vmatprep.mubr.f32.mxu0 %v6371_v9  ;;  %4319 = vmatprep.mubr.f32.mxu1 %v6371_v9 }
 0x854   :  { %5210 = vmatpush1.bf16.msra.mxu0 %v5783_v14  ;;  %5226 = vmatpush1.bf16.msra.mxu1 %v5787_v21 }
 0x855   :  { %5212 = vmatprep.subr.bf16.mxu0 %v5789_v22  ;;  %5228 = vmatprep.subr.bf16.mxu1 %v5791_v27 }
 0x858   :  { %5214 = vmatpush1.bf16.msra.mxu0 %v5794_v34  ;;  %5230 = vmatpush1.bf16.msra.mxu1 %v5798_v39 }
 0x859   :  { %5216 = vmatprep.subr.bf16.mxu0 %v5800_v40  ;;  %5232 = vmatprep.subr.bf16.mxu1 %v5803_v47  ;;  %v3977_v40 = vld [vmem:[#allocation2 + $0x7] ss:$8 sm:$0xf] }
 0x85c   :  { %5218 = vmatpush1.bf16.msra.mxu0 %v5806_v58  ;;  %5234 = vmatpush1.bf16.msra.mxu1 %v5810_v59 }
 0x85d   :  { %5236 = vmatprep.subr.bf16.mxu0 %v6397_v10  ;;  %5244 = vmatprep.subr.bf16.mxu1 %v6398_v11 }
 0x912   :  { %v3872_v15 = vpop.f32.mrb[28].mxu0  ;;  %v3943_v19 = vpop.f32.mrb[28].mxu1 }
 0x913   :  { %v3948_v24 = vadd.f32 %v3872_v15, %v6399_v20  ;;  %v3874_v28 = vpop.f32.mrb[29].mxu0  ;;  %v3945_v29 = vpop.f32.mrb[29].mxu1  ;;  %v3950_v49 = vadd.f32 %v3943_v19, %v6401_v46 }
 0x914   :  { %v3949_v37 = vadd.f32 %v3874_v28, %v6400_v33  ;;  %v3951_v31 = vadd.f32 %v3945_v29, %v5914_v26 }
 0x915   :  { %v4596_v41 = vmul.f32 -1.442695, %v3948_v24 }
 0x916   :  { %v4597_v45 = vmul.f32 -1.442695, %v3949_v37  ;;  %v4598_v60 = vmul.f32 -1.442695, %v3951_v31 }
 0x917   :  { %5499 = vpow2.f32 %v4596_v41 }
 0x918   :  { %5501 = vpow2.f32 %v4597_v45 }
 0x919   :  { %5503 = vtanh.f32 %v3950_v49 }
 0x921   :  { %v5500_v52 = vpop.eup %5499 }
 0x922   :  { %v5502_v53 = vpop.eup %5501  ;;  %v3955_v57 = vadd.f32 1.0, %v5500_v52  ;;  %v4044_v61 = vpop.f32.mrb[30].mxu0 }
 0x923   :  { %v4115_v62 = vpop.f32.mrb[30].mxu1  ;;  %v3961_v3 = vadd.f32 1.0, %v5502_v53  ;;  %v4046_v7 = vpop.f32.mrb[31].mxu0 }
 0x924   :  { %v4117_v8 = vpop.f32.mrb[31].mxu1  ;;  %5505 = vrcp.f32 %v3955_v57  ;;  %v4124_v14 = vcombine.low %v4044_v61, %v4046_v7  ;;  %v5504_v58 = vpop.eup %5503 }
 0x925   :  { %v4125_v21 = vcombine.low %v4115_v62, %v4117_v8  ;;  %5507 = vrcp.f32 %v3961_v3 }
 0x926   :  { %v4132_v22 = vrot.slane %v4124_v14, %v5824_v18 }
 0x927   :  { %v4139_v27 = vrot.slane %v4125_v21, %v5824_v18 }
 0x929   :  { %v4140_v34 = vcombine.low %v4132_v22, %v4139_v27 }
 0x92b   :  { %v4147_v39 = vrot.slane %v4140_v34, %v5824_v18 }
 0x92d   :  { %v4149_v47 = vadd.f32 %v4147_v39, %v3977_v40 }
 0x92e   :  { %v5506_v59 = vpop.eup %5505 }
 0x92f   :  { %v4601_v42 = vmul.f32 -1.442695, %v4149_v47  ;;  %v4157_v17 = vrot.slane %v4149_v47, 1  ;;  %v5508_v30 = vpop.eup %5507  ;;  %v3972_v44 = vmul.f32 %v5506_v59, %v5504_v58  ;;  %v4168_v23 = vrot.slane %v4149_v47, 3 }
 0x930   :  { %v3971_v4 = vmul.f32 %v5508_v30, %v6249_v51  ;;  %v4165_v43 = vrot.slane %v4149_v47, 2 }
 0x931   :  { %5509 = vpow2.f32 %v4601_v42  ;;  %v4602_v32 = vmul.f32 -1.442695, %v4157_v17  ;;  %v4603_v16 = vmul.f32 -1.442695, %v4168_v23 }
 0x932   :  { %v6316_v12 = vadd.f32 %v3972_v44, %v3971_v4 }
 0x933   :  { %5511 = vpow2.f32 %v4602_v32 }
 0x934   :  { %5513 = vpow2.f32 %v4603_v16 }
 0x93b   :  { %v5510_v25 = vpop.eup %5509 }
 0x93c   :  { %v4153_v18 = vadd.f32 1.0, %v5510_v25 }
 0x93d   :  { %v5512_v38 = vpop.eup %5511 }
 0x93e   :  { %5515 = vrcp.f32 %v4153_v18  ;;  %v4162_v13 = vadd.f32 1.0, %v5512_v38  ;;  %v5514_v51 = vpop.eup %5513 }
 0x93f   :  { %5517 = vtanh.f32 %v4165_v43  ;;  %v4173_v2 = vadd.f32 1.0, %v5514_v51 }
 0x940   :  { %5519 = vrcp.f32 %v4162_v13 }
 0x941   :  { %5521 = vpow2.f32 %v4598_v60 }
 0x942   :  { %5523 = vrcp.f32 %v4173_v2 }
 0x948   :  { %v5516_v54 = vpop.eup %5515 }
 0x949   :  { %v5518_v35 = vpop.eup %5517 }
 0x94a   :  { %v5520_v1 = vpop.eup %5519  ;;  %v4177_v63 = vmul.f32 %v5518_v35, %v5516_v54 }
 0x94b   :  { %v4176_v0 = vmul.f32 %v5520_v1, %v6253_v36  ;;  %v5522_v11 = vpop.eup %5521 }
 0x94c   :  { %v3968_v15 = vadd.f32 1.0, %v5522_v11  ;;  %v5524_v19 = vpop.eup %5523 }
 0x94d   :  { %v4178_v10 = vadd.f32 %v4177_v63, %v4176_v0 }
 0x94f   :  { %5525 = vtanh.f32 %v4178_v10 }
 0x950   :  { %5527 = vtanh.f32 %v6316_v12 }
 0x951   :  { %5529 = vrcp.f32 %v3968_v15 }
 0x959   :  { %v5526_v24 = vpop.eup %5525 }
 0x95a   :  { %v4180_v28 = vmul.f32 %v5526_v24, %v5524_v19  ;;  %v5528_v36 = vpop.eup %5527 }
 0x95b   :  { %v5530_v29 = vpop.eup %5529 }
 0x95c   :  { %4604 = vmatmul.mubr.msk.f32.vlgmr.msra.gmra.mrb[32].mxu0 %vm244_vm1, %v4180_v28  ;;  %4605 = vmatmul.mubr.msk.f32.vlgmr.msra.gmra.mrb[32].mxu1 %vm244_vm1, %v4180_v28  ;;  %v3975_v37 = vmul.f32 %v5530_v29, %v5528_v36 }
 0x95d   :  { %5238 = vmatpush1.bf16.msra.mxu0 %v5832_v48  ;;  %5246 = vmatpush1.bf16.msra.mxu1 %v5834_v50 }
 0x95e   :  { %5240 = vmatprep.subr.bf16.mxu0 %v5836_v55  ;;  %5248 = vmatprep.subr.bf16.mxu1 %v5838_v56 }
 0x95f   :  { %4393 = vmatprep.mubr.f32.mxu0 %v6371_v9  ;;  %4464 = vmatprep.mubr.f32.mxu1 %v6371_v9 }
 0x961   :  { %5242 = vmatpush1.bf16.msra.mxu0 %v5844_v5  ;;  %5250 = vmatpush1.bf16.msra.mxu1 %v5846_v6 }
 0x964   :  { %4606 = vmatmul.mubr.msk.f32.vlgmr.msra.gmra.mrb[32].mxu0 %vm644_vm2, %v3975_v37  ;;  %4607 = vmatmul.mubr.msk.f32.vlgmr.msra.gmra.mrb[32].mxu1 %vm644_vm2, %v3975_v37 }
 0xa37   :  { %v4395_v48 = vpop.f32.mrb[32].mxu0  ;;  %v4466_v50 = vpop.f32.mrb[32].mxu1 }
 0xa38   :  { %v4471_v55 = vadd.f32 %v4395_v48, %v6399_v20  ;;  %v4397_v56 = vpop.f32.mrb[33].mxu0  ;;  %v4468_v41 = vpop.f32.mrb[33].mxu1  ;;  %v4473_v52 = vadd.f32 %v4466_v50, %v6401_v46 }
 0xa39   :  { %v4472_v45 = vadd.f32 %v4397_v56, %v6400_v33  ;;  %v4474_v5 = vadd.f32 %v4468_v41, %v5914_v26 }
 0xa3a   :  { %v4608_v49 = vmul.f32 -1.442695, %v4471_v55 }
 0xa3b   :  { %v4609_v9 = vmul.f32 -1.442695, %v4472_v45  ;;  %v4610_v6 = vmul.f32 -1.442695, %v4474_v5 }
 0xa3c   :  { %5531 = vpow2.f32 %v4608_v49 }
 0xa3d   :  { %5533 = vpow2.f32 %v4609_v9 }
 0xa3e   :  { %5535 = vpow2.f32 %v4610_v6 }
 0xa3f   :  { %5537 = vtanh.f32 %v4473_v52 }
 0xa46   :  { %v5532_v53 = vpop.eup %5531 }
 0xa47   :  { %v5534_v57 = vpop.eup %5533  ;;  %v4478_v61 = vadd.f32 1.0, %v5532_v53 }
 0xa48   :  { %v4484_v62 = vadd.f32 1.0, %v5534_v57  ;;  %v5536_v20 = vpop.eup %5535 }
 0xa49   :  { %5539 = vrcp.f32 %v4478_v61  ;;  %v5538_v3 = vpop.eup %5537  ;;  %v4491_v14 = vadd.f32 1.0, %v5536_v20 }
 0xa4a   :  { %5541 = vrcp.f32 %v4484_v62 }
 0xa4b   :  { %5543 = vrcp.f32 %v4491_v14 }
 0xa53   :  { %v5540_v33 = vpop.eup %5539 }
 0xa54   :  { %v5542_v7 = vpop.eup %5541  ;;  %v4495_v8 = vmul.f32 %v5540_v33, %v5538_v3 }
 0xa55   :  { %v4494_v21 = vmul.f32 %v5542_v7, %v6316_v12  ;;  %v5544_v46 = vpop.eup %5543 }
 0xa57   :  { %v4496_v26 = vadd.f32 %v4495_v8, %v4494_v21 }
 0xa59   :  { %5545 = vtanh.f32 %v4496_v26 }
 0xa63   :  { %v5546_v22 = vpop.eup %5545 }
 0xa64   :  { %v4498_v27 = vmul.f32 %v5546_v22, %v5544_v46 }
 0xa66   :  { %4500 = vst.msk [vmem:[#allocation9] sm:$0x1] %vm4499_vm3, %v4498_v27 }
 0xa67   :  { %5624 = shalt.err (!%p5621_p0)
}
 0xa68   :  { %s5625_s26 = scalar_lea.hbm %s6353_s3, 16 }
 0xa69   :  { %p5626_p1 = scmp.ne.s32.totalorder %s6353_s3, %s5625_s26  ;;  %p5629_p2 = scmp.lt.u32.totalorder %s5625_s26, %s6353_s3 }
 0xa6b   :  { %p5631_p3 = pnand %p5629_p2, %p5626_p1 }
 0xa6d   :  { %5634 = shalt.err (!%p5631_p3)
}
 0xa6e   :  { %4510 = dma.vmem_to_hbm [thread:$0]  %s4508_s21, 16, %s6353_s3, [#allocation5]  }
 0xa6f   :  { %5639 = dma.done.wait [#allocation5], 16  }
 0xa70   :  { %5640 = vsyncadd [#allocation5], 4294967280 }
 0xa71   :  { %4514 = vsyncpa [#allocation4], 1 }
 0xa72   :  { %4515 = vsyncpa [#allocation7], 1 }
 0xa73   :  { %4516 = vsyncpa [#allocation5], 1 }

</bundles_post_ra>
